<compile_context>
chip_gen: v6e
topology: v6e:2x2x1
jax: 0.10.0
libtpu: 0.0.40
codegen_flags: <defaults>
</compile_context>

<pallas_src>
import math

import jax
import jax.numpy as jnp
from jax.experimental import pallas as pl
from jax.experimental.pallas import tpu as pltpu

# --- mini-BERT config (synthetic) -------------------------------------------
HIDDEN = 32
HEADS = 2
HEAD_DIM = HIDDEN // HEADS
LAYERS = 2
INTERMEDIATE = 64
MAX_POS = 16
LN_EPS = 1e-12


# --- in-kernel helpers (trace-time, f32 elementwise / bf16 MXU) ---------------
def _mm(a, b):
    """Matmul on the MXU: bf16 operands, f32 accumulation."""
    return jax.lax.dot_general(
        a.astype(jnp.bfloat16),
        b.astype(jnp.bfloat16),
        dimension_numbers=(((1,), (0,)), ((), ())),
        preferred_element_type=jnp.float32,
    )


def _layernorm(h, g, b):
    mean = jnp.mean(h, axis=-1, keepdims=True)
    var = jnp.mean((h - mean) ** 2, axis=-1, keepdims=True)
    return (h - mean) * jax.lax.rsqrt(var + LN_EPS) * g + b


def _gelu(y):
    # tanh-approx GELU.
    # TODO(synk): exact erf-based GELU for bit-parity with HF BERT's default activation.
    return 0.5 * y * (1.0 + jnp.tanh(0.7978845608028654 * (y + 0.044715 * y * y * y)))


# --- fused whole-forward kernel ----------------------------------------------
def _bert_forward_kernel(
    x_ref, pos_tok_ref, emb_g_ref, emb_b_ref,
    qkv_w_ref, qkv_b_ref, ao_w_ref, ao_b_ref, ln1_g_ref, ln1_b_ref,
    i_w_ref, i_b_ref, o_w_ref, o_b_ref, ln2_g_ref, ln2_b_ref,
    cls_ref,
):
    # embeddings = LayerNorm(inputs_embeds + pos + token_type); dropout = identity (eval)
    h = _layernorm(x_ref[0] + pos_tok_ref[...], emb_g_ref[...], emb_b_ref[...])  # (S, H)

    scale = 1.0 / math.sqrt(HEAD_DIM)
    for l in range(LAYERS):                      # static unroll over layers
        # --- self-attention ---------------------------------------------------
        # Fused Q/K/V projection: one MXU pass, lane-packed (S, 3H) output.
        qkv = _mm(h, qkv_w_ref[l]) + qkv_b_ref[l]            # (S, 3H)

        ctx_heads = []
        for hd in range(HEADS):                  # static unroll over heads (lane slices)
            lo = hd * HEAD_DIM
            q = qkv[:, lo:lo + HEAD_DIM]                              # (S, hd)
            k = qkv[:, HIDDEN + lo:HIDDEN + lo + HEAD_DIM]            # (S, hd)
            v = qkv[:, 2 * HIDDEN + lo:2 * HIDDEN + lo + HEAD_DIM]    # (S, hd)
            # q @ k^T with no materialized transpose (contract on dim 1 of both).
            s = jax.lax.dot_general(
                q.astype(jnp.bfloat16), k.astype(jnp.bfloat16),
                dimension_numbers=(((1,), (1,)), ((), ())),
                preferred_element_type=jnp.float32,
            ) * scale                                                  # (S, S)
            s = s - jnp.max(s, axis=-1, keepdims=True)
            p = jnp.exp(s)
            # EUP reciprocal instead of a VALU divide.
            p = p * pl.reciprocal(jnp.sum(p, axis=-1, keepdims=True), approx=True)
            ctx_heads.append(_mm(p, v))                                # (S, hd)
        ctx = jnp.concatenate(ctx_heads, axis=-1)                      # (S, H)

        attn_out = _mm(ctx, ao_w_ref[l]) + ao_b_ref[l]
        h1 = _layernorm(attn_out + h, ln1_g_ref[l], ln1_b_ref[l])

        # --- feed-forward -------------------------------------------------------
        inter = _gelu(_mm(h1, i_w_ref[l]) + i_b_ref[l])                # (S, I)
        ffn = _mm(inter, o_w_ref[l]) + o_b_ref[l]                      # (S, H)
        h = _layernorm(ffn + h1, ln2_g_ref[l], ln2_b_ref[l])

    # Only the CLS row ever leaves VMEM.
    cls_ref[0] = h[0:1, :]


# --- model (plain-JAX glue around the single kernel) ---------------------------
def init_params(key):
    ks = jax.random.split(key, 10)

    def nrm(k, shape):
        return 0.02 * jax.random.normal(k, shape, jnp.float32)

    L, H, I = LAYERS, HIDDEN, INTERMEDIATE
    return {
        "position_embeddings": nrm(ks[0], (MAX_POS, H)),
        "token_type_embeddings": nrm(ks[1], (2, H)),
        "emb_ln_g": jnp.ones((1, H), jnp.float32),
        "emb_ln_b": jnp.zeros((1, H), jnp.float32),
        # per-layer weights stacked along a leading layer axis (indexed statically in-kernel)
        "qkv_w": nrm(ks[2], (L, H, 3 * H)),
        "qkv_b": nrm(ks[3], (L, 1, 3 * H)),
        "ao_w": nrm(ks[4], (L, H, H)),
        "ao_b": nrm(ks[5], (L, 1, H)),
        "ln1_g": jnp.ones((L, 1, H), jnp.float32),
        "ln1_b": jnp.zeros((L, 1, H), jnp.float32),
        "i_w": nrm(ks[6], (L, H, I)),
        "i_b": nrm(ks[7], (L, 1, I)),
        "o_w": nrm(ks[8], (L, I, H)),
        "o_b": nrm(ks[9], (L, 1, H)),
        "ln2_g": jnp.ones((L, 1, H), jnp.float32),
        "ln2_b": jnp.zeros((L, 1, H), jnp.float32),
    }


def entity_embedding_forward(params, inputs_embeds):
    """Equivalent of EntityEmbedding.forward: bert(inputs_embeds=...)[0][:, 0, :]."""
    B, S, H = inputs_embeds.shape
    assert H == HIDDEN and S <= MAX_POS, "sequence length exceeds position table"
    L, I = LAYERS, INTERMEDIATE

    # position + token-type (ids = 0) embeddings, precomputed once per call.
    pos_tok = params["position_embeddings"][:S] + params["token_type_embeddings"][0][None, :]

    full = lambda shape: pl.BlockSpec(shape, lambda b: (0,) * len(shape))

    cls = pl.pallas_call(
        _bert_forward_kernel,
        out_shape=jax.ShapeDtypeStruct((B, 1, H), jnp.float32),
        grid=(B,),
        in_specs=[
            pl.BlockSpec((1, S, H), lambda b: (b, 0, 0)),   # inputs_embeds (per-batch block)
            full((S, H)),                                   # pos+token-type table
            full((1, H)), full((1, H)),                     # embedding LN gamma/beta
            full((L, H, 3 * H)), full((L, 1, 3 * H)),       # fused QKV w/b
            full((L, H, H)), full((L, 1, H)),               # attn output w/b
            full((L, 1, H)), full((L, 1, H)),               # LN1 gamma/beta
            full((L, H, I)), full((L, 1, I)),               # FFN up w/b
            full((L, I, H)), full((L, 1, H)),               # FFN down w/b
            full((L, 1, H)), full((L, 1, H)),               # LN2 gamma/beta
        ],
        out_specs=pl.BlockSpec((1, 1, H), lambda b: (b, 0, 0)),
        compiler_params=pltpu.CompilerParams(
            dimension_semantics=("parallel",),              # batch axis -> both TCs on v7x
        ),
    )(
        inputs_embeds, pos_tok,
        params["emb_ln_g"], params["emb_ln_b"],
        params["qkv_w"], params["qkv_b"], params["ao_w"], params["ao_b"],
        params["ln1_g"], params["ln1_b"],
        params["i_w"], params["i_b"], params["o_w"], params["o_b"],
        params["ln2_g"], params["ln2_b"],
    )
    return cls[:, 0, :]  # CLS token embedding, (B, H)


if __name__ == "__main__":
    key = jax.random.PRNGKey(0)
    pkey, xkey = jax.random.split(key)
    params = init_params(pkey)

    B, S = 2, 8
    inputs_embeds = jax.random.normal(xkey, (B, S, HIDDEN), jnp.float32)

    out = jax.jit(entity_embedding_forward)(params, inputs_embeds)
    out = jax.block_until_ready(out)
    assert out.shape == (B, HIDDEN) and out.dtype == jnp.float32
    assert bool(jnp.all(jnp.isfinite(out)))
    print("KERNEL_OK")
</pallas_src>

<mosaic_0001>
module attributes {stable_mosaic.version = 11 : i64} {
  func.func @_bert_forward_kernel(%arg0: i32, %arg1: memref<1x8x32xf32, #tpu.memory_space<vmem>>, %arg2: memref<8x32xf32, #tpu.memory_space<vmem>>, %arg3: memref<1x32xf32, #tpu.memory_space<vmem>>, %arg4: memref<1x32xf32, #tpu.memory_space<vmem>>, %arg5: memref<2x32x96xf32, #tpu.memory_space<vmem>>, %arg6: memref<2x1x96xf32, #tpu.memory_space<vmem>>, %arg7: memref<2x32x32xf32, #tpu.memory_space<vmem>>, %arg8: memref<2x1x32xf32, #tpu.memory_space<vmem>>, %arg9: memref<2x1x32xf32, #tpu.memory_space<vmem>>, %arg10: memref<2x1x32xf32, #tpu.memory_space<vmem>>, %arg11: memref<2x32x64xf32, #tpu.memory_space<vmem>>, %arg12: memref<2x1x64xf32, #tpu.memory_space<vmem>>, %arg13: memref<2x64x32xf32, #tpu.memory_space<vmem>>, %arg14: memref<2x1x32xf32, #tpu.memory_space<vmem>>, %arg15: memref<2x1x32xf32, #tpu.memory_space<vmem>>, %arg16: memref<2x1x32xf32, #tpu.memory_space<vmem>>, %arg17: memref<1x1x32xf32, #tpu.memory_space<vmem>>) attributes {dimension_semantics = [#tpu.dimension_semantics<parallel>], iteration_bounds = array<i64: 2>, scalar_prefetch = 0 : i64, scratch_operands = 0 : i64, tpu.core_type = #tpu.core_type<tc>, window_params = [{transform_indices = @transform_0, window_bounds = array<i64: 1, 8, 32>}, {pipeline_mode = #tpu.pipeline_mode<synchronous>, transform_indices = @transform_1, window_bounds = array<i64: 8, 32>}, {pipeline_mode = #tpu.pipeline_mode<synchronous>, transform_indices = @transform_2, window_bounds = array<i64: 1, 32>}, {pipeline_mode = #tpu.pipeline_mode<synchronous>, transform_indices = @transform_3, window_bounds = array<i64: 1, 32>}, {pipeline_mode = #tpu.pipeline_mode<synchronous>, transform_indices = @transform_4, window_bounds = array<i64: 2, 32, 96>}, {pipeline_mode = #tpu.pipeline_mode<synchronous>, transform_indices = @transform_5, window_bounds = array<i64: 2, 1, 96>}, {pipeline_mode = #tpu.pipeline_mode<synchronous>, transform_indices = @transform_6, window_bounds = array<i64: 2, 32, 32>}, {pipeline_mode = #tpu.pipeline_mode<synchronous>, transform_indices = @transform_7, window_bounds = array<i64: 2, 1, 32>}, {pipeline_mode = #tpu.pipeline_mode<synchronous>, transform_indices = @transform_8, window_bounds = array<i64: 2, 1, 32>}, {pipeline_mode = #tpu.pipeline_mode<synchronous>, transform_indices = @transform_9, window_bounds = array<i64: 2, 1, 32>}, {pipeline_mode = #tpu.pipeline_mode<synchronous>, transform_indices = @transform_10, window_bounds = array<i64: 2, 32, 64>}, {pipeline_mode = #tpu.pipeline_mode<synchronous>, transform_indices = @transform_11, window_bounds = array<i64: 2, 1, 64>}, {pipeline_mode = #tpu.pipeline_mode<synchronous>, transform_indices = @transform_12, window_bounds = array<i64: 2, 64, 32>}, {pipeline_mode = #tpu.pipeline_mode<synchronous>, transform_indices = @transform_13, window_bounds = array<i64: 2, 1, 32>}, {pipeline_mode = #tpu.pipeline_mode<synchronous>, transform_indices = @transform_14, window_bounds = array<i64: 2, 1, 32>}, {pipeline_mode = #tpu.pipeline_mode<synchronous>, transform_indices = @transform_15, window_bounds = array<i64: 2, 1, 32>}, {transform_indices = @transform_16, window_bounds = array<i64: 1, 1, 32>}]} {
    %c0 = arith.constant 0 : index
    %c0_0 = arith.constant 0 : index
    %c0_1 = arith.constant 0 : index
    %0 = vector.load %arg1[%c0, %c0_0, %c0_1] : memref<1x8x32xf32, #tpu.memory_space<vmem>>, vector<1x8x32xf32>
    %1 = vector.shape_cast %0 : vector<1x8x32xf32> to vector<8x32xf32>
    %c0_2 = arith.constant 0 : index
    %c0_3 = arith.constant 0 : index
    %2 = vector.load %arg2[%c0_2, %c0_3] : memref<8x32xf32, #tpu.memory_space<vmem>>, vector<8x32xf32>
    %3 = arith.addf %1, %2 : vector<8x32xf32>
    %c0_4 = arith.constant 0 : index
    %c0_5 = arith.constant 0 : index
    %4 = vector.load %arg3[%c0_4, %c0_5] : memref<1x32xf32, #tpu.memory_space<vmem>>, vector<1x32xf32>
    %c0_6 = arith.constant 0 : index
    %c0_7 = arith.constant 0 : index
    %5 = vector.load %arg4[%c0_6, %c0_7] : memref<1x32xf32, #tpu.memory_space<vmem>>, vector<1x32xf32>
    %cst = arith.constant dense<0.000000e+00> : vector<8xf32>
    %6 = vector.multi_reduction <add>, %3, %cst [1] : vector<8x32xf32> to vector<8xf32>
    %7 = vector.shape_cast %6 : vector<8xf32> to vector<8x1xf32>
    %cst_8 = arith.constant 3.200000e+01 : f32
    %8 = vector.broadcast %cst_8 : f32 to vector<8x1xf32>
    %9 = arith.divf %7, %8 : vector<8x1xf32>
    %10 = vector.broadcast %9 : vector<8x1xf32> to vector<8x32xf32>
    %11 = arith.subf %3, %10 : vector<8x32xf32>
    %12 = arith.mulf %11, %11 : vector<8x32xf32>
    %cst_9 = arith.constant dense<0.000000e+00> : vector<8xf32>
    %13 = vector.multi_reduction <add>, %12, %cst_9 [1] : vector<8x32xf32> to vector<8xf32>
    %14 = vector.shape_cast %13 : vector<8xf32> to vector<8x1xf32>
    %cst_10 = arith.constant 3.200000e+01 : f32
    %15 = vector.broadcast %cst_10 : f32 to vector<8x1xf32>
    %16 = arith.divf %14, %15 : vector<8x1xf32>
    %17 = vector.broadcast %9 : vector<8x1xf32> to vector<8x32xf32>
    %18 = arith.subf %3, %17 : vector<8x32xf32>
    %cst_11 = arith.constant 9.99999996E-13 : f32
    %19 = vector.broadcast %cst_11 : f32 to vector<8x1xf32>
    %20 = arith.addf %16, %19 : vector<8x1xf32>
    %21 = math.rsqrt %20 : vector<8x1xf32>
    %22 = vector.broadcast %21 : vector<8x1xf32> to vector<8x32xf32>
    %23 = arith.mulf %18, %22 : vector<8x32xf32>
    %24 = vector.broadcast %4 : vector<1x32xf32> to vector<8x32xf32>
    %25 = arith.mulf %23, %24 : vector<8x32xf32>
    %26 = vector.broadcast %5 : vector<1x32xf32> to vector<8x32xf32>
    %27 = arith.addf %25, %26 : vector<8x32xf32>
    %c0_12 = arith.constant 0 : index
    %c0_13 = arith.constant 0 : index
    %c0_14 = arith.constant 0 : index
    %28 = vector.load %arg5[%c0_12, %c0_13, %c0_14] : memref<2x32x96xf32, #tpu.memory_space<vmem>>, vector<1x32x96xf32>
    %29 = vector.shape_cast %28 : vector<1x32x96xf32> to vector<32x96xf32>
    %30 = arith.truncf %27 : vector<8x32xf32> to vector<8x32xbf16>
    %31 = arith.truncf %29 : vector<32x96xf32> to vector<32x96xbf16>
    %cst_15 = arith.constant dense<0.000000e+00> : vector<8x96xf32>
    %32 = tpu.matmul %30, %31, %cst_15 {dimension_numbers = #tpu.dot_dimension_numbers<[1], [0], [0], [1], [0, 0, 1, 1], [], []>} : vector<8x32xbf16>, vector<32x96xbf16>, vector<8x96xf32> -> vector<8x96xf32>
    %c0_16 = arith.constant 0 : index
    %c0_17 = arith.constant 0 : index
    %c0_18 = arith.constant 0 : index
    %33 = vector.load %arg6[%c0_16, %c0_17, %c0_18] : memref<2x1x96xf32, #tpu.memory_space<vmem>>, vector<1x1x96xf32>
    %34 = vector.shape_cast %33 : vector<1x1x96xf32> to vector<1x96xf32>
    %35 = vector.broadcast %34 : vector<1x96xf32> to vector<8x96xf32>
    %36 = arith.addf %32, %35 : vector<8x96xf32>
    %37 = vector.extract_strided_slice %36 {offsets = [0, 0], sizes = [8, 16], strides = [1, 1]} : vector<8x96xf32> to vector<8x16xf32>
    %38 = vector.extract_strided_slice %36 {offsets = [0, 32], sizes = [8, 16], strides = [1, 1]} : vector<8x96xf32> to vector<8x16xf32>
    %39 = vector.extract_strided_slice %36 {offsets = [0, 64], sizes = [8, 16], strides = [1, 1]} : vector<8x96xf32> to vector<8x16xf32>
    %40 = arith.truncf %37 : vector<8x16xf32> to vector<8x16xbf16>
    %41 = arith.truncf %38 : vector<8x16xf32> to vector<8x16xbf16>
    %cst_19 = arith.constant dense<0.000000e+00> : vector<8x8xf32>
    %42 = tpu.matmul %40, %41, %cst_19 {dimension_numbers = #tpu.dot_dimension_numbers<[1], [1], [0], [0], [0, 0, 1, 0], [], []>} : vector<8x16xbf16>, vector<8x16xbf16>, vector<8x8xf32> -> vector<8x8xf32>
    %cst_20 = arith.constant 2.500000e-01 : f32
    %43 = vector.broadcast %cst_20 : f32 to vector<8x8xf32>
    %44 = arith.mulf %42, %43 : vector<8x8xf32>
    %cst_21 = arith.constant dense<0xFF800000> : vector<8xf32>
    %45 = vector.multi_reduction <maximumf>, %44, %cst_21 [1] : vector<8x8xf32> to vector<8xf32>
    %46 = vector.shape_cast %45 : vector<8xf32> to vector<8x1xf32>
    %47 = vector.broadcast %46 : vector<8x1xf32> to vector<8x8xf32>
    %48 = arith.subf %44, %47 : vector<8x8xf32>
    %49 = math.exp %48 : vector<8x8xf32>
    %cst_22 = arith.constant dense<0.000000e+00> : vector<8xf32>
    %50 = vector.multi_reduction <add>, %49, %cst_22 [1] : vector<8x8xf32> to vector<8xf32>
    %51 = vector.shape_cast %50 : vector<8xf32> to vector<8x1xf32>
    %52 = tpu.reciprocal %51 {approx = true} : vector<8x1xf32> -> vector<8x1xf32>
    %53 = vector.broadcast %52 : vector<8x1xf32> to vector<8x8xf32>
    %54 = arith.mulf %49, %53 : vector<8x8xf32>
    %55 = arith.truncf %54 : vector<8x8xf32> to vector<8x8xbf16>
    %56 = arith.truncf %39 : vector<8x16xf32> to vector<8x16xbf16>
    %cst_23 = arith.constant dense<0.000000e+00> : vector<8x16xf32>
    %57 = tpu.matmul %55, %56, %cst_23 {dimension_numbers = #tpu.dot_dimension_numbers<[1], [0], [0], [1], [0, 0, 1, 1], [], []>} : vector<8x8xbf16>, vector<8x16xbf16>, vector<8x16xf32> -> vector<8x16xf32>
    %58 = vector.extract_strided_slice %36 {offsets = [0, 16], sizes = [8, 16], strides = [1, 1]} : vector<8x96xf32> to vector<8x16xf32>
    %59 = vector.extract_strided_slice %36 {offsets = [0, 48], sizes = [8, 16], strides = [1, 1]} : vector<8x96xf32> to vector<8x16xf32>
    %60 = vector.extract_strided_slice %36 {offsets = [0, 80], sizes = [8, 16], strides = [1, 1]} : vector<8x96xf32> to vector<8x16xf32>
    %61 = arith.truncf %58 : vector<8x16xf32> to vector<8x16xbf16>
    %62 = arith.truncf %59 : vector<8x16xf32> to vector<8x16xbf16>
    %cst_24 = arith.constant dense<0.000000e+00> : vector<8x8xf32>
    %63 = tpu.matmul %61, %62, %cst_24 {dimension_numbers = #tpu.dot_dimension_numbers<[1], [1], [0], [0], [0, 0, 1, 0], [], []>} : vector<8x16xbf16>, vector<8x16xbf16>, vector<8x8xf32> -> vector<8x8xf32>
    %cst_25 = arith.constant 2.500000e-01 : f32
    %64 = vector.broadcast %cst_25 : f32 to vector<8x8xf32>
    %65 = arith.mulf %63, %64 : vector<8x8xf32>
    %cst_26 = arith.constant dense<0xFF800000> : vector<8xf32>
    %66 = vector.multi_reduction <maximumf>, %65, %cst_26 [1] : vector<8x8xf32> to vector<8xf32>
    %67 = vector.shape_cast %66 : vector<8xf32> to vector<8x1xf32>
    %68 = vector.broadcast %67 : vector<8x1xf32> to vector<8x8xf32>
    %69 = arith.subf %65, %68 : vector<8x8xf32>
    %70 = math.exp %69 : vector<8x8xf32>
    %cst_27 = arith.constant dense<0.000000e+00> : vector<8xf32>
    %71 = vector.multi_reduction <add>, %70, %cst_27 [1] : vector<8x8xf32> to vector<8xf32>
    %72 = vector.shape_cast %71 : vector<8xf32> to vector<8x1xf32>
    %73 = tpu.reciprocal %72 {approx = true} : vector<8x1xf32> -> vector<8x1xf32>
    %74 = vector.broadcast %73 : vector<8x1xf32> to vector<8x8xf32>
    %75 = arith.mulf %70, %74 : vector<8x8xf32>
    %76 = arith.truncf %75 : vector<8x8xf32> to vector<8x8xbf16>
    %77 = arith.truncf %60 : vector<8x16xf32> to vector<8x16xbf16>
    %cst_28 = arith.constant dense<0.000000e+00> : vector<8x16xf32>
    %78 = tpu.matmul %76, %77, %cst_28 {dimension_numbers = #tpu.dot_dimension_numbers<[1], [0], [0], [1], [0, 0, 1, 1], [], []>} : vector<8x8xbf16>, vector<8x16xbf16>, vector<8x16xf32> -> vector<8x16xf32>
    %79 = tpu.concatenate %57, %78 in 1 : vector<8x16xf32>, vector<8x16xf32> -> vector<8x32xf32>
    %c0_29 = arith.constant 0 : index
    %c0_30 = arith.constant 0 : index
    %c0_31 = arith.constant 0 : index
    %80 = vector.load %arg7[%c0_29, %c0_30, %c0_31] : memref<2x32x32xf32, #tpu.memory_space<vmem>>, vector<1x32x32xf32>
    %81 = vector.shape_cast %80 : vector<1x32x32xf32> to vector<32x32xf32>
    %82 = arith.truncf %79 : vector<8x32xf32> to vector<8x32xbf16>
    %83 = arith.truncf %81 : vector<32x32xf32> to vector<32x32xbf16>
    %cst_32 = arith.constant dense<0.000000e+00> : vector<8x32xf32>
    %84 = tpu.matmul %82, %83, %cst_32 {dimension_numbers = #tpu.dot_dimension_numbers<[1], [0], [0], [1], [0, 0, 1, 1], [], []>} : vector<8x32xbf16>, vector<32x32xbf16>, vector<8x32xf32> -> vector<8x32xf32>
    %c0_33 = arith.constant 0 : index
    %c0_34 = arith.constant 0 : index
    %c0_35 = arith.constant 0 : index
    %85 = vector.load %arg8[%c0_33, %c0_34, %c0_35] : memref<2x1x32xf32, #tpu.memory_space<vmem>>, vector<1x1x32xf32>
    %86 = vector.shape_cast %85 : vector<1x1x32xf32> to vector<1x32xf32>
    %87 = vector.broadcast %86 : vector<1x32xf32> to vector<8x32xf32>
    %88 = arith.addf %84, %87 : vector<8x32xf32>
    %89 = arith.addf %88, %27 : vector<8x32xf32>
    %c0_36 = arith.constant 0 : index
    %c0_37 = arith.constant 0 : index
    %c0_38 = arith.constant 0 : index
    %90 = vector.load %arg9[%c0_36, %c0_37, %c0_38] : memref<2x1x32xf32, #tpu.memory_space<vmem>>, vector<1x1x32xf32>
    %91 = vector.shape_cast %90 : vector<1x1x32xf32> to vector<1x32xf32>
    %c0_39 = arith.constant 0 : index
    %c0_40 = arith.constant 0 : index
    %c0_41 = arith.constant 0 : index
    %92 = vector.load %arg10[%c0_39, %c0_40, %c0_41] : memref<2x1x32xf32, #tpu.memory_space<vmem>>, vector<1x1x32xf32>
    %93 = vector.shape_cast %92 : vector<1x1x32xf32> to vector<1x32xf32>
    %cst_42 = arith.constant dense<0.000000e+00> : vector<8xf32>
    %94 = vector.multi_reduction <add>, %89, %cst_42 [1] : vector<8x32xf32> to vector<8xf32>
    %95 = vector.shape_cast %94 : vector<8xf32> to vector<8x1xf32>
    %cst_43 = arith.constant 3.200000e+01 : f32
    %96 = vector.broadcast %cst_43 : f32 to vector<8x1xf32>
    %97 = arith.divf %95, %96 : vector<8x1xf32>
    %98 = vector.broadcast %97 : vector<8x1xf32> to vector<8x32xf32>
    %99 = arith.subf %89, %98 : vector<8x32xf32>
    %100 = arith.mulf %99, %99 : vector<8x32xf32>
    %cst_44 = arith.constant dense<0.000000e+00> : vector<8xf32>
    %101 = vector.multi_reduction <add>, %100, %cst_44 [1] : vector<8x32xf32> to vector<8xf32>
    %102 = vector.shape_cast %101 : vector<8xf32> to vector<8x1xf32>
    %cst_45 = arith.constant 3.200000e+01 : f32
    %103 = vector.broadcast %cst_45 : f32 to vector<8x1xf32>
    %104 = arith.divf %102, %103 : vector<8x1xf32>
    %105 = vector.broadcast %97 : vector<8x1xf32> to vector<8x32xf32>
    %106 = arith.subf %89, %105 : vector<8x32xf32>
    %cst_46 = arith.constant 9.99999996E-13 : f32
    %107 = vector.broadcast %cst_46 : f32 to vector<8x1xf32>
    %108 = arith.addf %104, %107 : vector<8x1xf32>
    %109 = math.rsqrt %108 : vector<8x1xf32>
    %110 = vector.broadcast %109 : vector<8x1xf32> to vector<8x32xf32>
    %111 = arith.mulf %106, %110 : vector<8x32xf32>
    %112 = vector.broadcast %91 : vector<1x32xf32> to vector<8x32xf32>
    %113 = arith.mulf %111, %112 : vector<8x32xf32>
    %114 = vector.broadcast %93 : vector<1x32xf32> to vector<8x32xf32>
    %115 = arith.addf %113, %114 : vector<8x32xf32>
    %c0_47 = arith.constant 0 : index
    %c0_48 = arith.constant 0 : index
    %c0_49 = arith.constant 0 : index
    %116 = vector.load %arg11[%c0_47, %c0_48, %c0_49] : memref<2x32x64xf32, #tpu.memory_space<vmem>>, vector<1x32x64xf32>
    %117 = vector.shape_cast %116 : vector<1x32x64xf32> to vector<32x64xf32>
    %118 = arith.truncf %115 : vector<8x32xf32> to vector<8x32xbf16>
    %119 = arith.truncf %117 : vector<32x64xf32> to vector<32x64xbf16>
    %cst_50 = arith.constant dense<0.000000e+00> : vector<8x64xf32>
    %120 = tpu.matmul %118, %119, %cst_50 {dimension_numbers = #tpu.dot_dimension_numbers<[1], [0], [0], [1], [0, 0, 1, 1], [], []>} : vector<8x32xbf16>, vector<32x64xbf16>, vector<8x64xf32> -> vector<8x64xf32>
    %c0_51 = arith.constant 0 : index
    %c0_52 = arith.constant 0 : index
    %c0_53 = arith.constant 0 : index
    %121 = vector.load %arg12[%c0_51, %c0_52, %c0_53] : memref<2x1x64xf32, #tpu.memory_space<vmem>>, vector<1x1x64xf32>
    %122 = vector.shape_cast %121 : vector<1x1x64xf32> to vector<1x64xf32>
    %123 = vector.broadcast %122 : vector<1x64xf32> to vector<8x64xf32>
    %124 = arith.addf %120, %123 : vector<8x64xf32>
    %cst_54 = arith.constant 5.000000e-01 : f32
    %125 = vector.broadcast %cst_54 : f32 to vector<8x64xf32>
    %126 = arith.mulf %125, %124 : vector<8x64xf32>
    %cst_55 = arith.constant 4.471500e-02 : f32
    %127 = vector.broadcast %cst_55 : f32 to vector<8x64xf32>
    %128 = arith.mulf %127, %124 : vector<8x64xf32>
    %129 = arith.mulf %128, %124 : vector<8x64xf32>
    %130 = arith.mulf %129, %124 : vector<8x64xf32>
    %131 = arith.addf %124, %130 : vector<8x64xf32>
    %cst_56 = arith.constant 0.797884583 : f32
    %132 = vector.broadcast %cst_56 : f32 to vector<8x64xf32>
    %133 = arith.mulf %132, %131 : vector<8x64xf32>
    %134 = math.tanh %133 : vector<8x64xf32>
    %cst_57 = arith.constant 1.000000e+00 : f32
    %135 = vector.broadcast %cst_57 : f32 to vector<8x64xf32>
    %136 = arith.addf %135, %134 : vector<8x64xf32>
    %137 = arith.mulf %126, %136 : vector<8x64xf32>
    %c0_58 = arith.constant 0 : index
    %c0_59 = arith.constant 0 : index
    %c0_60 = arith.constant 0 : index
    %138 = vector.load %arg13[%c0_58, %c0_59, %c0_60] : memref<2x64x32xf32, #tpu.memory_space<vmem>>, vector<1x64x32xf32>
    %139 = vector.shape_cast %138 : vector<1x64x32xf32> to vector<64x32xf32>
    %140 = arith.truncf %137 : vector<8x64xf32> to vector<8x64xbf16>
    %141 = arith.truncf %139 : vector<64x32xf32> to vector<64x32xbf16>
    %cst_61 = arith.constant dense<0.000000e+00> : vector<8x32xf32>
    %142 = tpu.matmul %140, %141, %cst_61 {dimension_numbers = #tpu.dot_dimension_numbers<[1], [0], [0], [1], [0, 0, 1, 1], [], []>} : vector<8x64xbf16>, vector<64x32xbf16>, vector<8x32xf32> -> vector<8x32xf32>
    %c0_62 = arith.constant 0 : index
    %c0_63 = arith.constant 0 : index
    %c0_64 = arith.constant 0 : index
    %143 = vector.load %arg14[%c0_62, %c0_63, %c0_64] : memref<2x1x32xf32, #tpu.memory_space<vmem>>, vector<1x1x32xf32>
    %144 = vector.shape_cast %143 : vector<1x1x32xf32> to vector<1x32xf32>
    %145 = vector.broadcast %144 : vector<1x32xf32> to vector<8x32xf32>
    %146 = arith.addf %142, %145 : vector<8x32xf32>
    %147 = arith.addf %146, %115 : vector<8x32xf32>
    %c0_65 = arith.constant 0 : index
    %c0_66 = arith.constant 0 : index
    %c0_67 = arith.constant 0 : index
    %148 = vector.load %arg15[%c0_65, %c0_66, %c0_67] : memref<2x1x32xf32, #tpu.memory_space<vmem>>, vector<1x1x32xf32>
    %149 = vector.shape_cast %148 : vector<1x1x32xf32> to vector<1x32xf32>
    %c0_68 = arith.constant 0 : index
    %c0_69 = arith.constant 0 : index
    %c0_70 = arith.constant 0 : index
    %150 = vector.load %arg16[%c0_68, %c0_69, %c0_70] : memref<2x1x32xf32, #tpu.memory_space<vmem>>, vector<1x1x32xf32>
    %151 = vector.shape_cast %150 : vector<1x1x32xf32> to vector<1x32xf32>
    %cst_71 = arith.constant dense<0.000000e+00> : vector<8xf32>
    %152 = vector.multi_reduction <add>, %147, %cst_71 [1] : vector<8x32xf32> to vector<8xf32>
    %153 = vector.shape_cast %152 : vector<8xf32> to vector<8x1xf32>
    %cst_72 = arith.constant 3.200000e+01 : f32
    %154 = vector.broadcast %cst_72 : f32 to vector<8x1xf32>
    %155 = arith.divf %153, %154 : vector<8x1xf32>
    %156 = vector.broadcast %155 : vector<8x1xf32> to vector<8x32xf32>
    %157 = arith.subf %147, %156 : vector<8x32xf32>
    %158 = arith.mulf %157, %157 : vector<8x32xf32>
    %cst_73 = arith.constant dense<0.000000e+00> : vector<8xf32>
    %159 = vector.multi_reduction <add>, %158, %cst_73 [1] : vector<8x32xf32> to vector<8xf32>
    %160 = vector.shape_cast %159 : vector<8xf32> to vector<8x1xf32>
    %cst_74 = arith.constant 3.200000e+01 : f32
    %161 = vector.broadcast %cst_74 : f32 to vector<8x1xf32>
    %162 = arith.divf %160, %161 : vector<8x1xf32>
    %163 = vector.broadcast %155 : vector<8x1xf32> to vector<8x32xf32>
    %164 = arith.subf %147, %163 : vector<8x32xf32>
    %cst_75 = arith.constant 9.99999996E-13 : f32
    %165 = vector.broadcast %cst_75 : f32 to vector<8x1xf32>
    %166 = arith.addf %162, %165 : vector<8x1xf32>
    %167 = math.rsqrt %166 : vector<8x1xf32>
    %168 = vector.broadcast %167 : vector<8x1xf32> to vector<8x32xf32>
    %169 = arith.mulf %164, %168 : vector<8x32xf32>
    %170 = vector.broadcast %149 : vector<1x32xf32> to vector<8x32xf32>
    %171 = arith.mulf %169, %170 : vector<8x32xf32>
    %172 = vector.broadcast %151 : vector<1x32xf32> to vector<8x32xf32>
    %173 = arith.addf %171, %172 : vector<8x32xf32>
    %c1 = arith.constant 1 : index
    %c0_76 = arith.constant 0 : index
    %c0_77 = arith.constant 0 : index
    %174 = vector.load %arg5[%c1, %c0_76, %c0_77] : memref<2x32x96xf32, #tpu.memory_space<vmem>>, vector<1x32x96xf32>
    %175 = vector.shape_cast %174 : vector<1x32x96xf32> to vector<32x96xf32>
    %176 = arith.truncf %173 : vector<8x32xf32> to vector<8x32xbf16>
    %177 = arith.truncf %175 : vector<32x96xf32> to vector<32x96xbf16>
    %cst_78 = arith.constant dense<0.000000e+00> : vector<8x96xf32>
    %178 = tpu.matmul %176, %177, %cst_78 {dimension_numbers = #tpu.dot_dimension_numbers<[1], [0], [0], [1], [0, 0, 1, 1], [], []>} : vector<8x32xbf16>, vector<32x96xbf16>, vector<8x96xf32> -> vector<8x96xf32>
    %c1_79 = arith.constant 1 : index
    %c0_80 = arith.constant 0 : index
    %c0_81 = arith.constant 0 : index
    %179 = vector.load %arg6[%c1_79, %c0_80, %c0_81] : memref<2x1x96xf32, #tpu.memory_space<vmem>>, vector<1x1x96xf32>
    %180 = vector.shape_cast %179 : vector<1x1x96xf32> to vector<1x96xf32>
    %181 = vector.broadcast %180 : vector<1x96xf32> to vector<8x96xf32>
    %182 = arith.addf %178, %181 : vector<8x96xf32>
    %183 = vector.extract_strided_slice %182 {offsets = [0, 0], sizes = [8, 16], strides = [1, 1]} : vector<8x96xf32> to vector<8x16xf32>
    %184 = vector.extract_strided_slice %182 {offsets = [0, 32], sizes = [8, 16], strides = [1, 1]} : vector<8x96xf32> to vector<8x16xf32>
    %185 = vector.extract_strided_slice %182 {offsets = [0, 64], sizes = [8, 16], strides = [1, 1]} : vector<8x96xf32> to vector<8x16xf32>
    %186 = arith.truncf %183 : vector<8x16xf32> to vector<8x16xbf16>
    %187 = arith.truncf %184 : vector<8x16xf32> to vector<8x16xbf16>
    %cst_82 = arith.constant dense<0.000000e+00> : vector<8x8xf32>
    %188 = tpu.matmul %186, %187, %cst_82 {dimension_numbers = #tpu.dot_dimension_numbers<[1], [1], [0], [0], [0, 0, 1, 0], [], []>} : vector<8x16xbf16>, vector<8x16xbf16>, vector<8x8xf32> -> vector<8x8xf32>
    %cst_83 = arith.constant 2.500000e-01 : f32
    %189 = vector.broadcast %cst_83 : f32 to vector<8x8xf32>
    %190 = arith.mulf %188, %189 : vector<8x8xf32>
    %cst_84 = arith.constant dense<0xFF800000> : vector<8xf32>
    %191 = vector.multi_reduction <maximumf>, %190, %cst_84 [1] : vector<8x8xf32> to vector<8xf32>
    %192 = vector.shape_cast %191 : vector<8xf32> to vector<8x1xf32>
    %193 = vector.broadcast %192 : vector<8x1xf32> to vector<8x8xf32>
    %194 = arith.subf %190, %193 : vector<8x8xf32>
    %195 = math.exp %194 : vector<8x8xf32>
    %cst_85 = arith.constant dense<0.000000e+00> : vector<8xf32>
    %196 = vector.multi_reduction <add>, %195, %cst_85 [1] : vector<8x8xf32> to vector<8xf32>
    %197 = vector.shape_cast %196 : vector<8xf32> to vector<8x1xf32>
    %198 = tpu.reciprocal %197 {approx = true} : vector<8x1xf32> -> vector<8x1xf32>
    %199 = vector.broadcast %198 : vector<8x1xf32> to vector<8x8xf32>
    %200 = arith.mulf %195, %199 : vector<8x8xf32>
    %201 = arith.truncf %200 : vector<8x8xf32> to vector<8x8xbf16>
    %202 = arith.truncf %185 : vector<8x16xf32> to vector<8x16xbf16>
    %cst_86 = arith.constant dense<0.000000e+00> : vector<8x16xf32>
    %203 = tpu.matmul %201, %202, %cst_86 {dimension_numbers = #tpu.dot_dimension_numbers<[1], [0], [0], [1], [0, 0, 1, 1], [], []>} : vector<8x8xbf16>, vector<8x16xbf16>, vector<8x16xf32> -> vector<8x16xf32>
    %204 = vector.extract_strided_slice %182 {offsets = [0, 16], sizes = [8, 16], strides = [1, 1]} : vector<8x96xf32> to vector<8x16xf32>
    %205 = vector.extract_strided_slice %182 {offsets = [0, 48], sizes = [8, 16], strides = [1, 1]} : vector<8x96xf32> to vector<8x16xf32>
    %206 = vector.extract_strided_slice %182 {offsets = [0, 80], sizes = [8, 16], strides = [1, 1]} : vector<8x96xf32> to vector<8x16xf32>
    %207 = arith.truncf %204 : vector<8x16xf32> to vector<8x16xbf16>
    %208 = arith.truncf %205 : vector<8x16xf32> to vector<8x16xbf16>
    %cst_87 = arith.constant dense<0.000000e+00> : vector<8x8xf32>
    %209 = tpu.matmul %207, %208, %cst_87 {dimension_numbers = #tpu.dot_dimension_numbers<[1], [1], [0], [0], [0, 0, 1, 0], [], []>} : vector<8x16xbf16>, vector<8x16xbf16>, vector<8x8xf32> -> vector<8x8xf32>
    %cst_88 = arith.constant 2.500000e-01 : f32
    %210 = vector.broadcast %cst_88 : f32 to vector<8x8xf32>
    %211 = arith.mulf %209, %210 : vector<8x8xf32>
    %cst_89 = arith.constant dense<0xFF800000> : vector<8xf32>
    %212 = vector.multi_reduction <maximumf>, %211, %cst_89 [1] : vector<8x8xf32> to vector<8xf32>
    %213 = vector.shape_cast %212 : vector<8xf32> to vector<8x1xf32>
    %214 = vector.broadcast %213 : vector<8x1xf32> to vector<8x8xf32>
    %215 = arith.subf %211, %214 : vector<8x8xf32>
    %216 = math.exp %215 : vector<8x8xf32>
    %cst_90 = arith.constant dense<0.000000e+00> : vector<8xf32>
    %217 = vector.multi_reduction <add>, %216, %cst_90 [1] : vector<8x8xf32> to vector<8xf32>
    %218 = vector.shape_cast %217 : vector<8xf32> to vector<8x1xf32>
    %219 = tpu.reciprocal %218 {approx = true} : vector<8x1xf32> -> vector<8x1xf32>
    %220 = vector.broadcast %219 : vector<8x1xf32> to vector<8x8xf32>
    %221 = arith.mulf %216, %220 : vector<8x8xf32>
    %222 = arith.truncf %221 : vector<8x8xf32> to vector<8x8xbf16>
    %223 = arith.truncf %206 : vector<8x16xf32> to vector<8x16xbf16>
    %cst_91 = arith.constant dense<0.000000e+00> : vector<8x16xf32>
    %224 = tpu.matmul %222, %223, %cst_91 {dimension_numbers = #tpu.dot_dimension_numbers<[1], [0], [0], [1], [0, 0, 1, 1], [], []>} : vector<8x8xbf16>, vector<8x16xbf16>, vector<8x16xf32> -> vector<8x16xf32>
    %225 = tpu.concatenate %203, %224 in 1 : vector<8x16xf32>, vector<8x16xf32> -> vector<8x32xf32>
    %c1_92 = arith.constant 1 : index
    %c0_93 = arith.constant 0 : index
    %c0_94 = arith.constant 0 : index
    %226 = vector.load %arg7[%c1_92, %c0_93, %c0_94] : memref<2x32x32xf32, #tpu.memory_space<vmem>>, vector<1x32x32xf32>
    %227 = vector.shape_cast %226 : vector<1x32x32xf32> to vector<32x32xf32>
    %228 = arith.truncf %225 : vector<8x32xf32> to vector<8x32xbf16>
    %229 = arith.truncf %227 : vector<32x32xf32> to vector<32x32xbf16>
    %cst_95 = arith.constant dense<0.000000e+00> : vector<8x32xf32>
    %230 = tpu.matmul %228, %229, %cst_95 {dimension_numbers = #tpu.dot_dimension_numbers<[1], [0], [0], [1], [0, 0, 1, 1], [], []>} : vector<8x32xbf16>, vector<32x32xbf16>, vector<8x32xf32> -> vector<8x32xf32>
    %c1_96 = arith.constant 1 : index
    %c0_97 = arith.constant 0 : index
    %c0_98 = arith.constant 0 : index
    %231 = vector.load %arg8[%c1_96, %c0_97, %c0_98] : memref<2x1x32xf32, #tpu.memory_space<vmem>>, vector<1x1x32xf32>
    %232 = vector.shape_cast %231 : vector<1x1x32xf32> to vector<1x32xf32>
    %233 = vector.broadcast %232 : vector<1x32xf32> to vector<8x32xf32>
    %234 = arith.addf %230, %233 : vector<8x32xf32>
    %235 = arith.addf %234, %173 : vector<8x32xf32>
    %c1_99 = arith.constant 1 : index
    %c0_100 = arith.constant 0 : index
    %c0_101 = arith.constant 0 : index
    %236 = vector.load %arg9[%c1_99, %c0_100, %c0_101] : memref<2x1x32xf32, #tpu.memory_space<vmem>>, vector<1x1x32xf32>
    %237 = vector.shape_cast %236 : vector<1x1x32xf32> to vector<1x32xf32>
    %c1_102 = arith.constant 1 : index
    %c0_103 = arith.constant 0 : index
    %c0_104 = arith.constant 0 : index
    %238 = vector.load %arg10[%c1_102, %c0_103, %c0_104] : memref<2x1x32xf32, #tpu.memory_space<vmem>>, vector<1x1x32xf32>
    %239 = vector.shape_cast %238 : vector<1x1x32xf32> to vector<1x32xf32>
    %cst_105 = arith.constant dense<0.000000e+00> : vector<8xf32>
    %240 = vector.multi_reduction <add>, %235, %cst_105 [1] : vector<8x32xf32> to vector<8xf32>
    %241 = vector.shape_cast %240 : vector<8xf32> to vector<8x1xf32>
    %cst_106 = arith.constant 3.200000e+01 : f32
    %242 = vector.broadcast %cst_106 : f32 to vector<8x1xf32>
    %243 = arith.divf %241, %242 : vector<8x1xf32>
    %244 = vector.broadcast %243 : vector<8x1xf32> to vector<8x32xf32>
    %245 = arith.subf %235, %244 : vector<8x32xf32>
    %246 = arith.mulf %245, %245 : vector<8x32xf32>
    %cst_107 = arith.constant dense<0.000000e+00> : vector<8xf32>
    %247 = vector.multi_reduction <add>, %246, %cst_107 [1] : vector<8x32xf32> to vector<8xf32>
    %248 = vector.shape_cast %247 : vector<8xf32> to vector<8x1xf32>
    %cst_108 = arith.constant 3.200000e+01 : f32
    %249 = vector.broadcast %cst_108 : f32 to vector<8x1xf32>
    %250 = arith.divf %248, %249 : vector<8x1xf32>
    %251 = vector.broadcast %243 : vector<8x1xf32> to vector<8x32xf32>
    %252 = arith.subf %235, %251 : vector<8x32xf32>
    %cst_109 = arith.constant 9.99999996E-13 : f32
    %253 = vector.broadcast %cst_109 : f32 to vector<8x1xf32>
    %254 = arith.addf %250, %253 : vector<8x1xf32>
    %255 = math.rsqrt %254 : vector<8x1xf32>
    %256 = vector.broadcast %255 : vector<8x1xf32> to vector<8x32xf32>
    %257 = arith.mulf %252, %256 : vector<8x32xf32>
    %258 = vector.broadcast %237 : vector<1x32xf32> to vector<8x32xf32>
    %259 = arith.mulf %257, %258 : vector<8x32xf32>
    %260 = vector.broadcast %239 : vector<1x32xf32> to vector<8x32xf32>
    %261 = arith.addf %259, %260 : vector<8x32xf32>
    %c1_110 = arith.constant 1 : index
    %c0_111 = arith.constant 0 : index
    %c0_112 = arith.constant 0 : index
    %262 = vector.load %arg11[%c1_110, %c0_111, %c0_112] : memref<2x32x64xf32, #tpu.memory_space<vmem>>, vector<1x32x64xf32>
    %263 = vector.shape_cast %262 : vector<1x32x64xf32> to vector<32x64xf32>
    %264 = arith.truncf %261 : vector<8x32xf32> to vector<8x32xbf16>
    %265 = arith.truncf %263 : vector<32x64xf32> to vector<32x64xbf16>
    %cst_113 = arith.constant dense<0.000000e+00> : vector<8x64xf32>
    %266 = tpu.matmul %264, %265, %cst_113 {dimension_numbers = #tpu.dot_dimension_numbers<[1], [0], [0], [1], [0, 0, 1, 1], [], []>} : vector<8x32xbf16>, vector<32x64xbf16>, vector<8x64xf32> -> vector<8x64xf32>
    %c1_114 = arith.constant 1 : index
    %c0_115 = arith.constant 0 : index
    %c0_116 = arith.constant 0 : index
    %267 = vector.load %arg12[%c1_114, %c0_115, %c0_116] : memref<2x1x64xf32, #tpu.memory_space<vmem>>, vector<1x1x64xf32>
    %268 = vector.shape_cast %267 : vector<1x1x64xf32> to vector<1x64xf32>
    %269 = vector.broadcast %268 : vector<1x64xf32> to vector<8x64xf32>
    %270 = arith.addf %266, %269 : vector<8x64xf32>
    %cst_117 = arith.constant 5.000000e-01 : f32
    %271 = vector.broadcast %cst_117 : f32 to vector<8x64xf32>
    %272 = arith.mulf %271, %270 : vector<8x64xf32>
    %cst_118 = arith.constant 4.471500e-02 : f32
    %273 = vector.broadcast %cst_118 : f32 to vector<8x64xf32>
    %274 = arith.mulf %273, %270 : vector<8x64xf32>
    %275 = arith.mulf %274, %270 : vector<8x64xf32>
    %276 = arith.mulf %275, %270 : vector<8x64xf32>
    %277 = arith.addf %270, %276 : vector<8x64xf32>
    %cst_119 = arith.constant 0.797884583 : f32
    %278 = vector.broadcast %cst_119 : f32 to vector<8x64xf32>
    %279 = arith.mulf %278, %277 : vector<8x64xf32>
    %280 = math.tanh %279 : vector<8x64xf32>
    %cst_120 = arith.constant 1.000000e+00 : f32
    %281 = vector.broadcast %cst_120 : f32 to vector<8x64xf32>
    %282 = arith.addf %281, %280 : vector<8x64xf32>
    %283 = arith.mulf %272, %282 : vector<8x64xf32>
    %c1_121 = arith.constant 1 : index
    %c0_122 = arith.constant 0 : index
    %c0_123 = arith.constant 0 : index
    %284 = vector.load %arg13[%c1_121, %c0_122, %c0_123] : memref<2x64x32xf32, #tpu.memory_space<vmem>>, vector<1x64x32xf32>
    %285 = vector.shape_cast %284 : vector<1x64x32xf32> to vector<64x32xf32>
    %286 = arith.truncf %283 : vector<8x64xf32> to vector<8x64xbf16>
    %287 = arith.truncf %285 : vector<64x32xf32> to vector<64x32xbf16>
    %cst_124 = arith.constant dense<0.000000e+00> : vector<8x32xf32>
    %288 = tpu.matmul %286, %287, %cst_124 {dimension_numbers = #tpu.dot_dimension_numbers<[1], [0], [0], [1], [0, 0, 1, 1], [], []>} : vector<8x64xbf16>, vector<64x32xbf16>, vector<8x32xf32> -> vector<8x32xf32>
    %c1_125 = arith.constant 1 : index
    %c0_126 = arith.constant 0 : index
    %c0_127 = arith.constant 0 : index
    %289 = vector.load %arg14[%c1_125, %c0_126, %c0_127] : memref<2x1x32xf32, #tpu.memory_space<vmem>>, vector<1x1x32xf32>
    %290 = vector.shape_cast %289 : vector<1x1x32xf32> to vector<1x32xf32>
    %291 = vector.broadcast %290 : vector<1x32xf32> to vector<8x32xf32>
    %292 = arith.addf %288, %291 : vector<8x32xf32>
    %293 = arith.addf %292, %261 : vector<8x32xf32>
    %c1_128 = arith.constant 1 : index
    %c0_129 = arith.constant 0 : index
    %c0_130 = arith.constant 0 : index
    %294 = vector.load %arg15[%c1_128, %c0_129, %c0_130] : memref<2x1x32xf32, #tpu.memory_space<vmem>>, vector<1x1x32xf32>
    %295 = vector.shape_cast %294 : vector<1x1x32xf32> to vector<1x32xf32>
    %c1_131 = arith.constant 1 : index
    %c0_132 = arith.constant 0 : index
    %c0_133 = arith.constant 0 : index
    %296 = vector.load %arg16[%c1_131, %c0_132, %c0_133] : memref<2x1x32xf32, #tpu.memory_space<vmem>>, vector<1x1x32xf32>
    %297 = vector.shape_cast %296 : vector<1x1x32xf32> to vector<1x32xf32>
    %cst_134 = arith.constant dense<0.000000e+00> : vector<8xf32>
    %298 = vector.multi_reduction <add>, %293, %cst_134 [1] : vector<8x32xf32> to vector<8xf32>
    %299 = vector.shape_cast %298 : vector<8xf32> to vector<8x1xf32>
    %cst_135 = arith.constant 3.200000e+01 : f32
    %300 = vector.broadcast %cst_135 : f32 to vector<8x1xf32>
    %301 = arith.divf %299, %300 : vector<8x1xf32>
    %302 = vector.broadcast %301 : vector<8x1xf32> to vector<8x32xf32>
    %303 = arith.subf %293, %302 : vector<8x32xf32>
    %304 = arith.mulf %303, %303 : vector<8x32xf32>
    %cst_136 = arith.constant dense<0.000000e+00> : vector<8xf32>
    %305 = vector.multi_reduction <add>, %304, %cst_136 [1] : vector<8x32xf32> to vector<8xf32>
    %306 = vector.shape_cast %305 : vector<8xf32> to vector<8x1xf32>
    %cst_137 = arith.constant 3.200000e+01 : f32
    %307 = vector.broadcast %cst_137 : f32 to vector<8x1xf32>
    %308 = arith.divf %306, %307 : vector<8x1xf32>
    %309 = vector.broadcast %301 : vector<8x1xf32> to vector<8x32xf32>
    %310 = arith.subf %293, %309 : vector<8x32xf32>
    %cst_138 = arith.constant 9.99999996E-13 : f32
    %311 = vector.broadcast %cst_138 : f32 to vector<8x1xf32>
    %312 = arith.addf %308, %311 : vector<8x1xf32>
    %313 = math.rsqrt %312 : vector<8x1xf32>
    %314 = vector.broadcast %313 : vector<8x1xf32> to vector<8x32xf32>
    %315 = arith.mulf %310, %314 : vector<8x32xf32>
    %316 = vector.broadcast %295 : vector<1x32xf32> to vector<8x32xf32>
    %317 = arith.mulf %315, %316 : vector<8x32xf32>
    %318 = vector.broadcast %297 : vector<1x32xf32> to vector<8x32xf32>
    %319 = arith.addf %317, %318 : vector<8x32xf32>
    %320 = vector.extract_strided_slice %319 {offsets = [0, 0], sizes = [1, 32], strides = [1, 1]} : vector<8x32xf32> to vector<1x32xf32>
    %c0_139 = arith.constant 0 : index
    %c0_140 = arith.constant 0 : index
    %c0_141 = arith.constant 0 : index
    %321 = vector.load %arg17[%c0_139, %c0_140, %c0_141] : memref<1x1x32xf32, #tpu.memory_space<vmem>>, vector<1x1x32xf32>
    %322 = vector.shape_cast %321 : vector<1x1x32xf32> to vector<1x32xf32>
    %323 = vector.shape_cast %320 : vector<1x32xf32> to vector<1x1x32xf32>
    tpu.vector_store %arg17[%c0_139, %c0_140, %c0_141], %323 {strides = array<i32>} : memref<1x1x32xf32, #tpu.memory_space<vmem>>, vector<1x1x32xf32>,
    return
  }
  func.func @transform_0(%arg0: i32) -> (i32, i32, i32) {
    %c0_i32 = arith.constant 0 : i32
    %c0_i32_0 = arith.constant 0 : i32
    %c0_i32_1 = arith.constant 0 : i32
    return %arg0, %c0_i32, %c0_i32_0 : i32, i32, i32
  }
  func.func @transform_1(%arg0: i32) -> (i32, i32) {
    %c0_i32 = arith.constant 0 : i32
    %c0_i32_0 = arith.constant 0 : i32
    %c0_i32_1 = arith.constant 0 : i32
    return %c0_i32, %c0_i32_0 : i32, i32
  }
  func.func @transform_2(%arg0: i32) -> (i32, i32) {
    %c0_i32 = arith.constant 0 : i32
    %c0_i32_0 = arith.constant 0 : i32
    %c0_i32_1 = arith.constant 0 : i32
    return %c0_i32, %c0_i32_0 : i32, i32
  }
  func.func @transform_3(%arg0: i32) -> (i32, i32) {
    %c0_i32 = arith.constant 0 : i32
    %c0_i32_0 = arith.constant 0 : i32
    %c0_i32_1 = arith.constant 0 : i32
    return %c0_i32, %c0_i32_0 : i32, i32
  }
  func.func @transform_4(%arg0: i32) -> (i32, i32, i32) {
    %c0_i32 = arith.constant 0 : i32
    %c0_i32_0 = arith.constant 0 : i32
    %c0_i32_1 = arith.constant 0 : i32
    %c0_i32_2 = arith.constant 0 : i32
    return %c0_i32, %c0_i32_0, %c0_i32_1 : i32, i32, i32
  }
  func.func @transform_5(%arg0: i32) -> (i32, i32, i32) {
    %c0_i32 = arith.constant 0 : i32
    %c0_i32_0 = arith.constant 0 : i32
    %c0_i32_1 = arith.constant 0 : i32
    %c0_i32_2 = arith.constant 0 : i32
    return %c0_i32, %c0_i32_0, %c0_i32_1 : i32, i32, i32
  }
  func.func @transform_6(%arg0: i32) -> (i32, i32, i32) {
    %c0_i32 = arith.constant 0 : i32
    %c0_i32_0 = arith.constant 0 : i32
    %c0_i32_1 = arith.constant 0 : i32
    %c0_i32_2 = arith.constant 0 : i32
    return %c0_i32, %c0_i32_0, %c0_i32_1 : i32, i32, i32
  }
  func.func @transform_7(%arg0: i32) -> (i32, i32, i32) {
    %c0_i32 = arith.constant 0 : i32
    %c0_i32_0 = arith.constant 0 : i32
    %c0_i32_1 = arith.constant 0 : i32
    %c0_i32_2 = arith.constant 0 : i32
    return %c0_i32, %c0_i32_0, %c0_i32_1 : i32, i32, i32
  }
  func.func @transform_8(%arg0: i32) -> (i32, i32, i32) {
    %c0_i32 = arith.constant 0 : i32
    %c0_i32_0 = arith.constant 0 : i32
    %c0_i32_1 = arith.constant 0 : i32
    %c0_i32_2 = arith.constant 0 : i32
    return %c0_i32, %c0_i32_0, %c0_i32_1 : i32, i32, i32
  }
  func.func @transform_9(%arg0: i32) -> (i32, i32, i32) {
    %c0_i32 = arith.constant 0 : i32
    %c0_i32_0 = arith.constant 0 : i32
    %c0_i32_1 = arith.constant 0 : i32
    %c0_i32_2 = arith.constant 0 : i32
    return %c0_i32, %c0_i32_0, %c0_i32_1 : i32, i32, i32
  }
  func.func @transform_10(%arg0: i32) -> (i32, i32, i32) {
    %c0_i32 = arith.constant 0 : i32
    %c0_i32_0 = arith.constant 0 : i32
    %c0_i32_1 = arith.constant 0 : i32
    %c0_i32_2 = arith.constant 0 : i32
    return %c0_i32, %c0_i32_0, %c0_i32_1 : i32, i32, i32
  }
  func.func @transform_11(%arg0: i32) -> (i32, i32, i32) {
    %c0_i32 = arith.constant 0 : i32
    %c0_i32_0 = arith.constant 0 : i32
    %c0_i32_1 = arith.constant 0 : i32
    %c0_i32_2 = arith.constant 0 : i32
    return %c0_i32, %c0_i32_0, %c0_i32_1 : i32, i32, i32
  }
  func.func @transform_12(%arg0: i32) -> (i32, i32, i32) {
    %c0_i32 = arith.constant 0 : i32
    %c0_i32_0 = arith.constant 0 : i32
    %c0_i32_1 = arith.constant 0 : i32
    %c0_i32_2 = arith.constant 0 : i32
    return %c0_i32, %c0_i32_0, %c0_i32_1 : i32, i32, i32
  }
  func.func @transform_13(%arg0: i32) -> (i32, i32, i32) {
    %c0_i32 = arith.constant 0 : i32
    %c0_i32_0 = arith.constant 0 : i32
    %c0_i32_1 = arith.constant 0 : i32
    %c0_i32_2 = arith.constant 0 : i32
    return %c0_i32, %c0_i32_0, %c0_i32_1 : i32, i32, i32
  }
  func.func @transform_14(%arg0: i32) -> (i32, i32, i32) {
    %c0_i32 = arith.constant 0 : i32
    %c0_i32_0 = arith.constant 0 : i32
    %c0_i32_1 = arith.constant 0 : i32
    %c0_i32_2 = arith.constant 0 : i32
    return %c0_i32, %c0_i32_0, %c0_i32_1 : i32, i32, i32
  }
  func.func @transform_15(%arg0: i32) -> (i32, i32, i32) {
    %c0_i32 = arith.constant 0 : i32
    %c0_i32_0 = arith.constant 0 : i32
    %c0_i32_1 = arith.constant 0 : i32
    %c0_i32_2 = arith.constant 0 : i32
    return %c0_i32, %c0_i32_0, %c0_i32_1 : i32, i32, i32
  }
  func.func @transform_16(%arg0: i32) -> (i32, i32, i32) {
    %c0_i32 = arith.constant 0 : i32
    %c0_i32_0 = arith.constant 0 : i32
    %c0_i32_1 = arith.constant 0 : i32
    return %arg0, %c0_i32, %c0_i32_0 : i32, i32, i32
  }
}

</mosaic_0001>

<bundles_post_ra>
// kernel: entity_embedding_forward.1
= control target key start
LH: loop header
LB: loop body
LE: loop exit
PB: predicated region body
PF: predicated region fallthrough
CT: control target
= control target key end

     0   :  { %s3017_s0 = inlined_call_operand.vmem [shape: f32[2,8,32], index: 0, kind: input, shape index: {}]   ;;  %s3018_s1 = inlined_call_operand.vmem [shape: f32[8,32], index: 1, kind: input, shape index: {}]   ;;  %s3019_s2 = inlined_call_operand.hbm [shape: f32[1,32], index: 2, kind: input, shape index: {}]   ;;  %s3020_s3 = inlined_call_operand.hbm [shape: f32[1,32], index: 3, kind: input, shape index: {}]   ;;  %s3021_s4 = inlined_call_operand.vmem [shape: f32[2,32,96], index: 4, kind: input, shape index: {}]   ;;  %s3022_s5 = inlined_call_operand.vmem [shape: f32[2,1,96], index: 5, kind: input, shape index: {}]   ;;  %s3023_s6 = inlined_call_operand.vmem [shape: f32[2,32,32], index: 6, kind: input, shape index: {}]   ;;  %s3024_s7 = inlined_call_operand.hbm [shape: f32[2,1,32], index: 7, kind: input, shape index: {}]   ;;  %s3025_s8 = inlined_call_operand.vmem [shape: f32[2,1,32], index: 8, kind: input, shape index: {}]   ;;  %s3026_s9 = inlined_call_operand.vmem [shape: f32[2,1,32], index: 9, kind: input, shape index: {}]   ;;  %s3027_s10 = inlined_call_operand.vmem [shape: f32[2,32,64], index: 10, kind: input, shape index: {}]   ;;  %s3028_s11 = inlined_call_operand.vmem [shape: f32[2,1,64], index: 11, kind: input, shape index: {}]   ;;  %s3029_s12 = inlined_call_operand.vmem [shape: f32[2,64,32], index: 12, kind: input, shape index: {}]   ;;  %s3030_s13 = inlined_call_operand.hbm [shape: f32[2,1,32], index: 13, kind: input, shape index: {}]   ;;  %s3031_s14 = inlined_call_operand.hbm [shape: f32[2,1,32], index: 14, kind: input, shape index: {}]   ;;  %s3032_s15 = inlined_call_operand.hbm [shape: f32[2,1,32], index: 15, kind: input, shape index: {}]   ;;  %s3033_s16 = inlined_call_operand.hbm [shape: f32[2,1,32], index: 16, kind: output, shape index: {}]  }
   0x1   :  { %3047 = sst [smem:[#allocation25_spill]] %s3017_s0 }
   0x2   :  { %3048 = sst [smem:[#allocation26_spill]] %s3020_s3 }
   0x3   :  { %21 = vsyncpa [#allocation3], 0 }
   0x4   :  { %22 = vsyncpa [#allocation6], 0 }
   0x5   :  { %23 = vsyncpa [#allocation9], 0 }
   0x6   :  { %24 = vsyncpa [#allocation12], 0 }
   0x7   :  { %25 = vsyncpa [#allocation4], 0 }
   0x8   :  { %27 = vsyncpa [#allocation4 + $0x1], 0  ;;  %s2559_s21 = smov 0   ;;  %s2561_s22 = smov 0  }
   0x9   :  { %s2563_s23 = smov 0   ;;  %s2565_s24 = smov 0  }
   0xa LB: > { %3049 = sst [smem:[#allocation19_spill]] %s2443_s21  ;;  %s2580_s25 = sadd.s32 4294967295, %s2455_s24   ;;  %s2455_s24 = sphi %s2565_s24, %s3077_s24   ;;  %s2451_s23 = sphi %s2563_s23, %s3079_s23   ;;  %s2447_s22 = sphi %s2561_s22, %s3081_s22   ;;  %s2443_s21 = sphi %s2559_s21, %s3080_s21  }
   0xb   : > { %3050 = sst [smem:[#allocation20_spill]] %s2451_s23  ;;  %s1841_s26 = sadd.s32 4294967294, %s2455_s24  }
   0xc   : > { %3051 = sst [smem:[#allocation21_spill]] %s2455_s24  ;;  %s2584_s27 = sadd.s32 1, %s2455_s24  }
   0xd   : > { %3052 = sst [smem:[#allocation22_spill]] %s2584_s27  ;;  %s381_s28 = sadd.s32 1, %s2451_s23 }
   0xe   : > { %s378_s29 = ssub.s32 %s2455_s24, %s2584_s27  ;;  %p391_p0 = scmp.ne.s32.totalorder %s2451_s23, %s2447_s22 }
   0xf   : > { %p379_p1 = scmp.eq.s32.totalorder %s378_s29, 0  ;;  %p392_p2 = scmp.eq.s32.totalorder %s2580_s25, 1 }
  0x10   : > { %p397_p3 = scmp.ne.s32.totalorder %s2447_s22, %s2443_s21  ;;  %p398_p4 = scmp.eq.s32.totalorder %s1841_s26, 1 }
  0x11   : > { %s2595_s30 = scalar_select %p379_p1, %s2451_s23, %s381_s28  }
  0x12   : > { %p2597_p5 = por %p392_p2, %p391_p0  ;;  %p2601_p6 = por %p398_p4, %p397_p3 }
  0x13   : > { %3053 = sst [smem:[#allocation23_spill]] %s2595_s30  ;;  %p1842_p7 = scmp.ge.s32.totalorder %s2455_s24, 1 }
  0x14   : > { %s3055_s17 = scalar_select %p2601_p6, 1, 0 }
  0x15   : > { %p405_p8 = scmp.lt.s32.totalorder %s2455_s24, 3  ;;  %p3039_p9 = scmp.eq.s32.totalorder %s2580_s25, 0 }
  0x16   : > { %3056 = sst [smem:[#allocation24_spill]] %s3055_s17  ;;  %s2457_s19 = smov [#allocation5]  }
  0x17   : > { %p2608_p10 = pnand %p1842_p7, %p405_p8  ;;  %s432_s20 = sshll.u32 %s2457_s19, 4  ;;  %s433_s20 = int_to_ptr.vmem [resolvable:$true] %s432_s20 }
  0x18   : > { %s2458_s28 = smov [#allocation8]   ;;  %s2459_s30 = smov [#allocation2]  }
  0x19   : > { %p2109_p11 = pneg %p2608_p10  ;;  %s479_s29 = sshll.u32 %s2458_s28, 4  ;;  %s2620_s29 = int_to_ptr.vmem [resolvable:$true] %s479_s29 }
  0x1a   : > { %s421_s23 = sshll.u32 %s2459_s30, 4  ;;  %s2234_s19 = scalar_lea.vmem %s433_s20, 16  ;;  %s422_s23 = int_to_ptr.vmem [resolvable:$true] %s421_s23 }
  0x1b   : > { %p2616_p12 = pnand %p3039_p9, %p2109_p11  ;;  %p2235_p0 = scmp.ne.s32.totalorder %s433_s20, %s2234_s19 }
  0x1c   : > { %s2241_s17 = scalar_lea.vmem %s433_s20, 32  ;;  %p2242_p3 = scmp.lt.s32.totalorder %s433_s20, %s433_s20 }
  0x1d   : > { %p2624_p13 = pneg %p2616_p12  ;;  %p2243_p4 = scmp.lt.s32.totalorder %s2241_s17, %s2234_s19 }
  0x1f   : > { %p2237_p1 = pnand %p2235_p0, %p2624_p13  ;;  %p2244_p7 = por %p2243_p4, %p2242_p3 }
  0x21   : > { %p2238_p2 = pneg %p2237_p1 }
  0x23   : > { %p2245_p8 = pnand %p2244_p7, %p2238_p2 }
  0x25   : > { %2248 = shalt.err (!%p2245_p8)
}
  0x26   : > { %s3060_s3 = sld [smem:[#allocation26_spill]]  ;;  %s2260_s21 = scalar_lea.vmem %s2620_s29, 32 }
  0x27   : > { %p2261_p11 = scmp.ne.s32.totalorder %s2620_s29, %s2260_s21  ;;  %p2268_p9 = scmp.lt.s32.totalorder %s2620_s29, %s2620_s29 }
  0x28   : > { %p2269_p3 = scmp.lt.s32.totalorder %s2260_s21, %s2260_s21 }
  0x29   : > { %p2263_p0 = pnand %p2261_p11, %p2624_p13 }
  0x2a   : > { %p2270_p2 = por %p2269_p3, %p2268_p9 }
  0x2b   : > { %p2264_p1 = pneg %p2263_p0 }
  0x2c   : > { %2115 = dma.hbm_to_vmem [thread:$0]  (!%p2616_p12), %s3060_s3, 16, %s433_s20, [#allocation6]  }
  0x2d   : > { %p2271_p4 = pnand %p2270_p2, %p2264_p1 }
  0x2f   : > { %2274 = shalt.err (!%p2271_p4)
}
  0x30   : > { %s3041_s17 = smov 16   ;;  %s3043_s19 = smov 1  }
  0x31   : > { %2121 = dma.hbm_to_vmem [thread:$0]  (!%p2616_p12), %s3030_s13, 32, %s2620_s29, [#allocation9], %s3041_s17, %s3041_s17, %s3043_s19  }
  0x32   : > { %s2286_s28 = scalar_lea.vmem %s422_s23, 16  ;;  %s2293_s21 = scalar_lea.vmem %s422_s23, 32 }
  0x33   : > { %p2287_p7 = scmp.ne.s32.totalorder %s422_s23, %s2286_s28  ;;  %p2294_p11 = scmp.lt.s32.totalorder %s422_s23, %s422_s23 }
  0x34   : > { %p2295_p0 = scmp.lt.s32.totalorder %s2293_s21, %s2286_s28 }
  0x35   : > { %p2289_p9 = pnand %p2287_p7, %p2624_p13 }
  0x36   : > { %p2296_p1 = por %p2295_p0, %p2294_p11 }
  0x37   : > { %p2290_p8 = pneg %p2289_p9 }
  0x39   : > { %p2297_p3 = pnand %p2296_p1, %p2290_p8 }
  0x3b   : > { %2300 = shalt.err (!%p2297_p3)
}
  0x3c   : > { %2112 = dma.hbm_to_vmem [thread:$0]  (!%p2616_p12), %s3019_s2, 16, %s422_s23, [#allocation3]  }
  0x3d   : > { %s2462_s29 = smov [#allocation7]   ;;  %s2463_s30 = smov [#allocation10]  }
  0x3e   : > { %s451_s20 = sshll.u32 %s2462_s29, 4  ;;  %s492_s17 = sshll.u32 %s2463_s30, 4  ;;  %s452_s20 = int_to_ptr.vmem [resolvable:$true] %s451_s20  ;;  %s493_s17 = int_to_ptr.vmem [resolvable:$true] %s492_s17 }
  0x3f   : > { %s2312_s19 = scalar_lea.vmem %s452_s20, 32  ;;  %p2320_p9 = scmp.lt.s32.totalorder %s452_s20, %s452_s20 }
  0x40   : > { %p2313_p2 = scmp.ne.s32.totalorder %s452_s20, %s2312_s19  ;;  %p2321_p8 = scmp.lt.s32.totalorder %s2312_s19, %s2312_s19 }
  0x42   : > { %p2315_p4 = pnand %p2313_p2, %p2624_p13  ;;  %p2322_p11 = por %p2321_p8, %p2320_p9 }
  0x44   : > { %p2316_p7 = pneg %p2315_p4 }
  0x46   : > { %p2323_p0 = pnand %p2322_p11, %p2316_p7 }
  0x48   : > { %2326 = shalt.err (!%p2323_p0)
}
  0x49   : > { %s3061_s3 = smov 1   ;;  %s3062_s24 = smov 16  }
  0x4a   : > { %2118 = dma.hbm_to_vmem [thread:$0]  (!%p2616_p12), %s3024_s7, 32, %s452_s20, [#allocation6], %s3062_s24, %s3062_s24, %s3061_s3  }
  0x4b   : > { %s2338_s21 = scalar_lea.vmem %s493_s17, 32  ;;  %p2346_p4 = scmp.lt.s32.totalorder %s493_s17, %s493_s17 }
  0x4c   : > { %p2339_p1 = scmp.ne.s32.totalorder %s493_s17, %s2338_s21  ;;  %p2347_p9 = scmp.lt.s32.totalorder %s2338_s21, %s2338_s21 }
  0x4e   : > { %p2341_p3 = pnand %p2339_p1, %p2624_p13  ;;  %p2348_p7 = por %p2347_p9, %p2346_p4 }
  0x50   : > { %p2342_p2 = pneg %p2341_p3 }
  0x52   : > { %p2349_p8 = pnand %p2348_p7, %p2342_p2 }
  0x54   : > { %2352 = shalt.err (!%p2349_p8)
}
  0x55   : > { %2124 = dma.hbm_to_vmem [thread:$0]  (!%p2616_p12), %s3031_s14, 32, %s493_s17, [#allocation9], %s3062_s24, %s3062_s24, %s3061_s3  }
  0x56   : > { %s2464_s20 = smov [#allocation11]  }
  0x57   : > { %s505_s30 = sshll.u32 %s2464_s20, 4  ;;  %s506_s30 = int_to_ptr.vmem [resolvable:$true] %s505_s30 }
  0x58   : > { %s2364_s23 = scalar_lea.vmem %s506_s30, 32  ;;  %p2372_p3 = scmp.lt.s32.totalorder %s506_s30, %s506_s30 }
  0x59   : > { %p2365_p11 = scmp.ne.s32.totalorder %s506_s30, %s2364_s23  ;;  %p2373_p2 = scmp.lt.s32.totalorder %s2364_s23, %s2364_s23 }
  0x5b   : > { %p2367_p0 = pnand %p2365_p11, %p2624_p13  ;;  %p2374_p4 = por %p2373_p2, %p2372_p3 }
  0x5d   : > { %p2368_p1 = pneg %p2367_p0 }
  0x5f   : > { %p2375_p9 = pnand %p2374_p4, %p2368_p1 }
  0x61   : > { %2378 = shalt.err (!%p2375_p9)
}
  0x62   : > { %2127 = dma.hbm_to_vmem [thread:$0]  (!%p2616_p12), %s3032_s15, 32, %s506_s30, [#allocation12], %s3062_s24, %s3062_s24, %s3061_s3  }
  0x63   : > { %528 = sbr.rel (%p2608_p10) target bundleno = 5220 (0x1464), region = 84  ;;  %p3063_p13 = scmp.eq.s32.totalorder (!%p2608_p10), %s2580_s25, 0 }
  0x68   : > { %2422 = dma.done.wait (%p3063_p13), [#allocation3], 16   ;;  %p3064_p7 = pmov %p3063_p13 }
  0x6a   : > { %2424 = vsyncadd (%p3064_p7), [#allocation3], 4294967280  ;;  %p3065_p8 = pmov %p3064_p7 }
  0x6b   : > { %p3066_p11 = pmov %p3064_p7 }
  0x6c   : > { %2426 = dma.done.wait (%p3065_p8), [#allocation6], 48  }
  0x6d   : > { %2428 = vsyncadd (%p3066_p11), [#allocation6], 4294967248  ;;  %p3067_p0 = pmov %p3064_p7 }
  0x6f   : > { %2430 = dma.done.wait (%p3067_p0), [#allocation9], 64   ;;  %p3068_p12 = pmov %p3067_p0 }
  0x70   : > { %p3069_p10 = pmov %p3067_p0 }
  0x71   : > { %2432 = vsyncadd (%p3068_p12), [#allocation9], 4294967232 }
  0x72   : > { %2434 = dma.done.wait (%p3069_p10), [#allocation12], 32   ;;  %p3070_p1 = pmov %p3067_p0 }
  0x73   : > { %p596_p3 = scmp.lt.s32.totalorder %s2580_s25, 1  ;;  %s3071_s24 = sld [smem:[#allocation25_spill]]  ;;  %v602_v1 = vld [vmem:[%s3018_s1] sm:$0xff]  ;;  %vm606_vm0 = vcmask 261120   ;;  %v637_v9 = vld [vmem:[%s3021_s4 + $0x10] sm:$0xff]  ;;  %v638_v10 = vld [vmem:[%s3021_s4 + $0x18] sm:$0xff] }
  0x74   : > { %2436 = vsyncadd (%p3070_p1), [#allocation12], 4294967264  ;;  %v635_v11 = vld [vmem:[%s3021_s4] sm:$0xff]  ;;  %v2465_v12 = vmov 0.0   ;;  %v641_v13 = vpack.c.bf16 %v638_v10, %v637_v9  ;;  %v636_v14 = vld [vmem:[%s3021_s4 + $0x8] sm:$0xff]  ;;  %vm2466_vm1 = vmmov 0  }
  0x75   : > { %s597_s27 = scalar_select %p596_p3, %s2580_s25, 1  ;;  %1963 = vmatprep.subr.bf16.mxu1 %v2465_v12  ;;  %1967 = vmatprep.mubr.msk.bf16.mxu1 %vm2466_vm1, %v2465_v12  ;;  %v640_v15 = vpack.c.bf16 %v636_v14, %v635_v11  ;;  %v1858_v20 = vld [vmem:[#allocation2] ss:$0 sm:$0xff]  ;;  %v1859_v22 = vld [vmem:[#allocation5] ss:$0 sm:$0xff]  ;;  %vm696_vm2 = vcmask 130048  }
  0x76   : > { %1977 = vmatprep.subr.bf16.mxu0 %v2465_v12  ;;  %1979 = vmatprep.mubr.msk.bf16.mxu0 %vm2466_vm1, %v2465_v12  ;;  %v1860_v26 = vld [vmem:[%s3022_s5] ss:$0 sm:$0xff]  ;;  %s2468_s19 = smov 96   ;;  %s2469_s29 = smov 80   ;;  %vm744_vm3 = vcmask 64512   ;;  %vm762_vm4 = vcmask 1043456  }
  0x77   : > { %s1857_s18 = sshll.u32 %s597_s27, 3  ;;  %1964 = vmatpush3.bf16.msra.mxu1 %v641_v13  ;;  %s3046_s20 = smov 48   ;;  %v925_v9 = vld [vmem:[%s3023_s6 + $0x18] sm:$0xff]  ;;  %v922_v11 = vld [vmem:[%s3023_s6] sm:$0xff]  ;;  %v923_v13 = vld [vmem:[%s3023_s6 + $0x8] sm:$0xff]  ;;  %vm1095_vm5 = vcmask 523264  }
  0x78   : > { %1965 = vmatprep.subr.bf16.mxu1 %v2465_v12  ;;  %s2471_s30 = smov 64   ;;  %v927_v14 = vpack.c.bf16 %v923_v13, %v922_v11  ;;  %s3045_s23 = smov 16   ;;  %vm1711_vm6 = vcmask 253952  }
  0x79   : > { %s599_s21 = scalar_lea.vmem %s3071_s24, %s1857_s18  ;;  %s3073_s27 = smov 16  }
  0x7a   : > { %v601_v0 = vld [vmem:[%s599_s21] sm:$0xff]  ;;  %s2467_s21 = smov 112  }
  0x7b   : > { %v603_v2 = vadd.f32 %v602_v1, %v601_v0  ;;  %1966 = vmatpush3.bf16.msra.mxu1 %v640_v15 }
  0x7c   : > { %1971 = vmatprep.subr.bf16.mxu1 %v2465_v12 }
  0x7d   : > { %v607_v3 = vsel %vm606_vm0, %v603_v2, 0.0 }
  0x7e   : > { %608 = vadd.xlane.f32.xlu0 %v607_v3 }
 0x107   : > { %v609_v4 = vpop.xlane.xlu0 %608 }
 0x108   : > { %v611_v5 = vmul.f32 0.03125, %v609_v4 }
 0x10a   : > { %v612_v6 = vsub.f32 %v603_v2, %v611_v5 }
 0x10c   : > { %v613_v7 = vmul.f32 %v612_v6, %v612_v6 }
 0x10e   : > { %v614_v8 = vsel %vm606_vm0, %v613_v7, 0.0 }
 0x10f   : > { %615 = vadd.xlane.f32.xlu0 %v614_v8  ;;  %v924_v8 = vld [vmem:[%s3023_s6 + $0x10] sm:$0xff] }
 0x110   : > { %v928_v10 = vpack.c.bf16 %v925_v9, %v924_v8 }
 0x198   : > { %v616_v16 = vpop.xlane.xlu0 %615 }
 0x199   : > { %v617_v17 = vmul.f32 0.03125, %v616_v16 }
 0x19b   : > { %v618_v18 = vadd.f32 1e-12, %v617_v17 }
 0x19d   : > { %2193 = vrsqrt.f32 %v618_v18 }
 0x1aa   : > { %v2194_v19 = vpop.eup %2193 }
 0x1ab   : > { %v620_v21 = vmul.f32 %v2194_v19, %v612_v6 }
 0x1ad   : > { %v627_v23 = vmul.f32 %v1858_v20, %v620_v21 }
 0x1af   : > { %v2735_v24 = vadd.f32 %v1859_v22, %v627_v23 }
 0x1b1   : > { %v639_v25 = vpack.c.bf16 %v2735_v24, %v2735_v24 }
 0x1b3   : > { %1968 = vmatmul.mubr.msk.bf16.vlgmr.msra.gmra.mxu1 %vm606_vm0, %v639_v25 }
 0x1b4   : > { %1973 = vmatprep.mubr.msk.bf16.mxu1 %vm2466_vm1, %v2465_v12 }
 0x273   : > { %v686_v27 = vpop.f32.mrf.mxu1 }
 0x274   : > { %v687_v28 = vadd.f32 %v1860_v26, %v686_v27  ;;  %v1866_v27 = vld [vmem:[#allocation7] ss:$0 sm:$0xff] }
 0x275   : > { %v1969_v29 = vpop.f32.mrf.mxu1 }
 0x276   : > { %v692_v30 = vpack.c.bf16 %v687_v28, %v687_v28 }
 0x277   : > { %v689_v31 = vpop.f32.mrf.mxu1 }
 0x278   : > { %806 = vrot.lane.b32.xlu0 %v692_v30, %s2467_s21  ;;  %694 = vrot.lane.b32.xlu1 %v692_v30, %s2468_s19 }
 0x279   : > { %v1970_v32 = vpop.f32.mrf.mxu1 }
 0x27c   : > { %808 = vrot.lane.b32.xlu1 %v692_v30, %s2469_s29 }
 0x2ea   : > { %v695_v33 = vpop.permute.xlu1 %694  ;;  %v807_v37 = vpop.permute.xlu0 %806 }
 0x2eb   : > { %v701_v34 = vsel %vm696_vm2, %v695_v33, 0 }
 0x2ec   : > { %1972 = vmatpush3.bf16.xpose.msra.mxu1 %v701_v34 }
 0x2ed   : > { %1983 = vmatprep.subr.bf16.mxu1 %v2465_v12 }
 0x2ee   : > { %v809_v35 = vpop.permute.xlu1 %808 }
 0x2ef   : > { %v814_v36 = vsel %vm696_vm2, %v809_v35, 0 }
 0x2f3   : > { %1974 = vmatmul.mubr.msk.bf16.vlgmr.msra.gmra.mxu1 %vm696_vm2, %v692_v30 }
 0x2f4   : > { %1984 = vmatpush3.bf16.xpose.msra.mxu1 %v814_v36  ;;  %1985 = vmatprep.mubr.msk.bf16.mxu1 %vm2466_vm1, %v2465_v12 }
 0x2f5   : > { %1995 = vmatprep.subr.bf16.mxu1 %v2465_v12 }
 0x2fb   : > { %1986 = vmatmul.mubr.msk.bf16.vlgmr.msra.gmra.mxu1 %vm696_vm2, %v807_v37 }
 0x2fc   : > { %1999 = vmatprep.mubr.msk.bf16.mxu1 %vm2466_vm1, %v2465_v12  ;;  %1996 = vmatpush3.bf16.msra.mxu1 %v928_v10 }
 0x2fd   : > { %1997 = vmatprep.subr.bf16.mxu1 %v2465_v12 }
 0x300   : > { %1998 = vmatpush3.bf16.msra.mxu1 %v927_v14 }
 0x301   : > { %2011 = vmatprep.subr.bf16.mxu1 %v2465_v12 }
 0x3b3   : > { %v737_v38 = vpop.f32.mrf.mxu1 }
 0x3b4   : > { %v743_v39 = vmul.f32 0.25, %v737_v38 }
 0x3b5   : > { %v1975_v40 = vpop.f32.mrf.mxu1 }
 0x3b6   : > { %v745_v41 = vsel %vm744_vm3, %v743_v39, -inf  ;;  %v1011_v40 = vld [vmem:[%s3027_s10 + $0x10] sm:$0xff] }
 0x3b7   : > { %746 = vmax.xlane.f32.xlu1 %v745_v41  ;;  %v740_v42 = vpop.f32.mrf.mxu1 }
 0x3b8   : > { %v1009_v42 = vld [vmem:[%s3027_s10] sm:$0xff] }
 0x3b9   : > { %v1976_v43 = vpop.f32.mrf.mxu1 }
 0x3ba   : > { %v1010_v43 = vld [vmem:[%s3027_s10 + $0x8] sm:$0xff] }
 0x3bb   : > { %v850_v44 = vpop.f32.mrf.mxu1 }
 0x3bc   : > { %v856_v45 = vmul.f32 0.25, %v850_v44  ;;  %v1014_v44 = vpack.c.bf16 %v1010_v43, %v1009_v42  ;;  %v1874_v43 = vld [vmem:[#allocation10] ss:$0 sm:$0xff] }
 0x3bd   : > { %v1987_v46 = vpop.f32.mrf.mxu1 }
 0x3be   : > { %v857_v47 = vsel %vm744_vm3, %v856_v45, -inf }
 0x3bf   : > { %858 = vmax.xlane.f32.xlu0 %v857_v47  ;;  %v853_v48 = vpop.f32.mrf.mxu1 }
 0x3c1   : > { %v1988_v49 = vpop.f32.mrf.mxu1 }
 0x3c2   : > { %v1868_v49 = vld [vmem:[%s3025_s8] ss:$0 sm:$0xff] }
 0x3d5   : > { %869 = vrot.lane.b32.xlu0 %v692_v30, %s3046_s20  ;;  %s2473_s20 = smov [#allocation13]  }
 0x440   : > { %v747_v50 = vpop.xlane.xlu1 %746 }
 0x441   : > { %v748_v51 = vsub.f32 %v743_v39, %v747_v50 }
 0x443   : > { %v749_v52 = vmul.f32 1.442695, %v748_v51  ;;  %v1869_v51 = vld [vmem:[%s3026_s9] ss:$0 sm:$0xff] }
 0x445   : > { %2195 = vpow2.f32 %v749_v52 }
 0x448   : > { %v859_v53 = vpop.xlane.xlu0 %858 }
 0x449   : > { %v860_v54 = vsub.f32 %v856_v45, %v859_v53 }
 0x44b   : > { %v861_v55 = vmul.f32 1.442695, %v860_v54 }
 0x44c   : > { %v870_v2 = vpop.permute.xlu0 %869 }
 0x44d   : > { %2197 = vpow2.f32 %v861_v55  ;;  %v875_v4 = vsel %vm762_vm4, %v870_v2, 0  ;;  %v1081_v55 = vld [vmem:[%s3029_s12 + $0x30] sm:$0xff] }
 0x452   : > { %v2196_v56 = vpop.eup %2195 }
 0x453   : > { %v751_v57 = vsel %vm744_vm3, %v2196_v56, 0.0 }
 0x454   : > { %752 = vadd.xlane.f32.xlu1 %v751_v57  ;;  %v1079_v57 = vld [vmem:[%s3029_s12 + $0x20] sm:$0xff] }
 0x45a   : > { %v2198_v58 = vpop.eup %2197 }
 0x45b   : > { %v863_v59 = vsel %vm744_vm3, %v2198_v58, 0.0 }
 0x45c   : > { %864 = vadd.xlane.f32.xlu1 %v863_v59  ;;  %v1080_v59 = vld [vmem:[%s3029_s12 + $0x28] sm:$0xff] }
 0x46d   : > { %757 = vrot.lane.b32.xlu1 %v692_v30, %s2471_s30 }
 0x4dd   : > { %v753_v60 = vpop.xlane.xlu1 %752 }
 0x4de   : > { %2199 = vrcp.f32 %v753_v60  ;;  %v1086_v60 = vpack.c.bf16 %v1080_v59, %v1079_v57 }
 0x4e5   : > { %v865_v61 = vpop.xlane.xlu1 %864 }
 0x4e6   : > { %2201 = vrcp.f32 %v865_v61  ;;  %v1077_v61 = vld [vmem:[%s3029_s12 + $0x10] sm:$0xff] }
 0x4e9   : > { %v758_v62 = vpop.permute.xlu1 %757 }
 0x4ea   : > { %v764_v63 = vsel %vm762_vm4, %v758_v62, 0  ;;  %v1078_v62 = vld [vmem:[%s3029_s12 + $0x18] sm:$0xff] }
 0x4eb   : > { %v2200_v0 = vpop.eup %2199  ;;  %1978 = vmatpush3.bf16.msra.mxu0 %v764_v63  ;;  %v1085_v63 = vpack.c.bf16 %v1078_v62, %v1077_v61 }
 0x4ec   : > { %1989 = vmatprep.subr.bf16.mxu0 %v2465_v12  ;;  %v755_v1 = vmul.f32 %v2200_v0, %v2196_v56  ;;  %v1082_v56 = vld [vmem:[%s3029_s12 + $0x38] sm:$0xff]  ;;  %v1075_v0 = vld [vmem:[%s3029_s12] sm:$0xff] }
 0x4ee   : > { %v756_v3 = vpack.c.bf16 %v755_v1, %v755_v1  ;;  %v1076_v1 = vld [vmem:[%s3029_s12 + $0x8] sm:$0xff] }
 0x4ef   : > { %v1084_v2 = vpack.c.bf16 %v1076_v1, %v1075_v0 }
 0x4f0   : > { %1980 = vmatmul.mubr.msk.bf16.vlgmr.msra.gmra.mxu0 %vm744_vm3, %v756_v3  ;;  %v1870_v3 = vld [vmem:[%s3028_s11] ss:$0 sm:$0xff] }
 0x4f1   : > { %1990 = vmatpush3.bf16.msra.mxu0 %v875_v4  ;;  %1991 = vmatprep.mubr.msk.bf16.mxu0 %vm2466_vm1, %v2465_v12 }
 0x4f2   : > { %2003 = vmatprep.subr.bf16.mxu0 %v2465_v12 }
 0x4f3   : > { %v2202_v5 = vpop.eup %2201 }
 0x4f4   : > { %v867_v6 = vmul.f32 %v2202_v5, %v2198_v58  ;;  %v1087_v58 = vpack.c.bf16 %v1082_v56, %v1081_v55 }
 0x4f6   : > { %v868_v7 = vpack.c.bf16 %v867_v6, %v867_v6 }
 0x4f8   : > { %1992 = vmatmul.mubr.msk.bf16.vlgmr.msra.gmra.mxu0 %vm744_vm3, %v868_v7 }
 0x4f9   : > { %2007 = vmatprep.mubr.msk.bf16.mxu0 %vm2466_vm1, %v2465_v12 }
 0x5b0   : > { %v800_v15 = vpop.f32.mrf.mxu0 }
 0x5b2   : > { %v1981_v16 = vpop.f32.mrf.mxu0 }
 0x5b4   : > { %v803_v17 = vpop.f32.mrf.mxu0 }
 0x5b6   : > { %v1982_v18 = vpop.f32.mrf.mxu0 }
 0x5b8   : > { %v911_v19 = vpop.f32.mrf.mxu0 }
 0x5b9   : > { %918 = vrot.lane.b32.xlu1 %v911_v19, %s3045_s23  ;;  %s2383_s23 = sshll.u32 %s2473_s20, 4  ;;  %s2384_s23 = int_to_ptr.vmem [resolvable:$false] %s2383_s23 }
 0x5ba   : > { %v1993_v20 = vpop.f32.mrf.mxu0 }
 0x5bb   : > { %v1872_v20 = vld [vmem:[#allocation8] ss:$0 sm:$0xff] }
 0x5bc   : > { %v914_v21 = vpop.f32.mrf.mxu0 }
 0x5be   : > { %v1994_v22 = vpop.f32.mrf.mxu0 }
 0x62b   : > { %v919_v23 = vpop.permute.xlu1 %918 }
 0x62c   : > { %v921_v25 = vsel %vm696_vm2, %v800_v15, %v919_v23 }
 0x62d   : > { %v926_v26 = vpack.c.bf16 %v921_v25, %v921_v25 }
 0x62f   : > { %2000 = vmatmul.mubr.msk.bf16.vlgmr.msra.gmra.mxu1 %vm606_vm0, %v926_v26 }
 0x630   : > { %2019 = vmatprep.mubr.msk.bf16.mxu1 %vm2466_vm1, %v2465_v12  ;;  %2012 = vmatpush3.bf16.msra.mxu1 %v1087_v58 }
 0x631   : > { %2013 = vmatprep.subr.bf16.mxu1 %v2465_v12 }
 0x634   : > { %2014 = vmatpush3.bf16.msra.mxu1 %v1086_v60 }
 0x635   : > { %2015 = vmatprep.subr.bf16.mxu1 %v2465_v12 }
 0x638   : > { %2016 = vmatpush3.bf16.msra.mxu1 %v1085_v63 }
 0x639   : > { %2017 = vmatprep.subr.bf16.mxu1 %v2465_v12 }
 0x63c   : > { %2018 = vmatpush3.bf16.msra.mxu1 %v1084_v2 }
 0x63d   : > { %2037 = vmatprep.subr.bf16.mxu1 %v2465_v12 }
 0x6ef   : > { %v973_v28 = vpop.f32.mrf.mxu1 }
 0x6f0   : > { %v974_v29 = vadd.f32 %v1866_v27, %v973_v28 }
 0x6f1   : > { %v2001_v30 = vpop.f32.mrf.mxu1 }
 0x6f2   : > { %v979_v31 = vadd.f32 %v974_v29, %v2735_v24  ;;  %v1012_v24 = vld [vmem:[%s3027_s10 + $0x18] sm:$0xff] }
 0x6f3   : > { %v976_v32 = vpop.f32.mrf.mxu1  ;;  %v1015_v41 = vpack.c.bf16 %v1012_v24, %v1011_v40 }
 0x6f4   : > { %v982_v33 = vsel %vm606_vm0, %v979_v31, 0.0 }
 0x6f5   : > { %983 = vadd.xlane.f32.xlu1 %v982_v33  ;;  %v2002_v34 = vpop.f32.mrf.mxu1  ;;  %2004 = vmatpush3.bf16.msra.mxu0 %v1015_v41 }
 0x6f6   : > { %2005 = vmatprep.subr.bf16.mxu0 %v2465_v12  ;;  %v1878_v34 = vld [vmem:[%s3021_s4 + $0x30] sm:$0xff] }
 0x6f9   : > { %2006 = vmatpush3.bf16.msra.mxu0 %v1014_v44 }
 0x6fa   : > { %2023 = vmatprep.subr.bf16.mxu0 %v2465_v12 }
 0x77e   : > { %v984_v35 = vpop.xlane.xlu1 %983 }
 0x77f   : > { %v985_v36 = vmul.f32 0.03125, %v984_v35  ;;  %v1879_v35 = vld [vmem:[%s3021_s4 + $0x38] sm:$0xff] }
 0x781   : > { %v986_v37 = vsub.f32 %v979_v31, %v985_v36  ;;  %v1176_v36 = vpack.c.bf16 %v1879_v35, %v1878_v34  ;;  %v1890_v34 = vld [vmem:[%s3023_s6 + $0x38] sm:$0xff] }
 0x783   : > { %v987_v38 = vmul.f32 %v986_v37, %v986_v37 }
 0x785   : > { %v988_v39 = vsel %vm606_vm0, %v987_v38, 0.0  ;;  %v1877_v38 = vld [vmem:[%s3021_s4 + $0x28] sm:$0xff] }
 0x786   : > { %989 = vadd.xlane.f32.xlu0 %v988_v39 }
 0x80f   : > { %v990_v45 = vpop.xlane.xlu0 %989 }
 0x810   : > { %v991_v46 = vmul.f32 0.03125, %v990_v45  ;;  %v1875_v45 = vld [vmem:[#allocation11] ss:$0 sm:$0xff] }
 0x812   : > { %v992_v47 = vadd.f32 1e-12, %v991_v46 }
 0x814   : > { %2203 = vrsqrt.f32 %v992_v47 }
 0x821   : > { %v2204_v48 = vpop.eup %2203 }
 0x822   : > { %v994_v50 = vmul.f32 %v2204_v48, %v986_v37  ;;  %v1876_v37 = vld [vmem:[%s3021_s4 + $0x20] sm:$0xff] }
 0x823   : > { %v1175_v39 = vpack.c.bf16 %v1877_v38, %v1876_v37  ;;  %v1888_v37 = vld [vmem:[%s3023_s6 + $0x28] sm:$0xff] }
 0x824   : > { %v1001_v52 = vmul.f32 %v1868_v49, %v994_v50  ;;  %v1881_v49 = vld [vmem:[%s3022_s5 + $0x1] ss:$0 sm:$0xff] }
 0x826   : > { %v1008_v53 = vadd.f32 %v1869_v51, %v1001_v52 }
 0x828   : > { %v1013_v54 = vpack.c.bf16 %v1008_v53, %v1008_v53 }
 0x82a   : > { %2008 = vmatmul.mubr.msk.bf16.vlgmr.msra.gmra.mxu0 %vm606_vm0, %v1013_v54 }
 0x82b   : > { %2027 = vmatprep.mubr.msk.bf16.mxu0 %vm2466_vm1, %v2465_v12  ;;  %2024 = vmatpush3.bf16.msra.mxu0 %v1176_v36  ;;  %v1887_v36 = vld [vmem:[%s3023_s6 + $0x20] sm:$0xff] }
 0x82c   : > { %2025 = vmatprep.subr.bf16.mxu0 %v2465_v12  ;;  %v1461_v38 = vpack.c.bf16 %v1888_v37, %v1887_v36 }
 0x82f   : > { %2026 = vmatpush3.bf16.msra.mxu0 %v1175_v39 }
 0x830   : > { %2031 = vmatprep.subr.bf16.mxu0 %v2465_v12 }
 0x8ea   : > { %v1060_v4 = vpop.f32.mrf.mxu0 }
 0x8eb   : > { %v1061_v5 = vadd.f32 %v1870_v3, %v1060_v4 }
 0x8ec   : > { %v2009_v6 = vpop.f32.mrf.mxu0 }
 0x8ed   : > { %v1067_v7 = vmul.f32 0.044715, %v1061_v5  ;;  %v1066_v16 = vmul.f32 0.5, %v1061_v5 }
 0x8ee   : > { %v1063_v8 = vpop.f32.mrf.mxu0 }
 0x8ef   : > { %v1068_v9 = vmul.f32 %v1067_v7, %v1061_v5 }
 0x8f0   : > { %v2010_v10 = vpop.f32.mrf.mxu0 }
 0x8f1   : > { %v1069_v11 = vmul.f32 %v1068_v9, %v1061_v5 }
 0x8f3   : > { %v1070_v13 = vadd.f32 %v1069_v11, %v1061_v5 }
 0x8f5   : > { %v1071_v14 = vmul.f32 0.7978846, %v1070_v13 }
 0x8f7   : > { %2205 = vtanh.f32 %v1071_v14 }
 0x904   : > { %v2206_v15 = vpop.eup %2205 }
 0x905   : > { %v1073_v17 = vadd.f32 1.0, %v2206_v15 }
 0x907   : > { %v1074_v18 = vmul.f32 %v1073_v17, %v1066_v16 }
 0x909   : > { %v1083_v19 = vpack.c.bf16 %v1074_v18, %v1074_v18 }
 0x90b   : > { %2020 = vmatmul.mubr.msk.bf16.vlgmr.msra.gmra.mxu1 %vm1095_vm5, %v1083_v19 }
 0x90c   : > { %2039 = vmatprep.mubr.msk.bf16.mxu1 %vm2466_vm1, %v2465_v12 }
 0x9cb   : > { %v1133_v21 = vpop.f32.mrf.mxu1 }
 0x9cc   : > { %v1134_v22 = vadd.f32 %v1872_v20, %v1133_v21 }
 0x9cd   : > { %v2021_v23 = vpop.f32.mrf.mxu1 }
 0x9ce   : > { %v1139_v25 = vadd.f32 %v1134_v22, %v1008_v53 }
 0x9cf   : > { %v1136_v26 = vpop.f32.mrf.mxu1 }
 0x9d0   : > { %v1142_v27 = vsel %vm606_vm0, %v1139_v25, 0.0 }
 0x9d1   : > { %1143 = vadd.xlane.f32.xlu1 %v1142_v27  ;;  %v2022_v28 = vpop.f32.mrf.mxu1 }
 0xa5a   : > { %v1144_v29 = vpop.xlane.xlu1 %1143 }
 0xa5b   : > { %v1145_v30 = vmul.f32 0.03125, %v1144_v29 }
 0xa5d   : > { %v1146_v31 = vsub.f32 %v1139_v25, %v1145_v30 }
 0xa5f   : > { %v1147_v32 = vmul.f32 %v1146_v31, %v1146_v31 }
 0xa61   : > { %v1148_v33 = vsel %vm606_vm0, %v1147_v32, 0.0 }
 0xa62   : > { %1149 = vadd.xlane.f32.xlu1 %v1148_v33  ;;  %v1889_v33 = vld [vmem:[%s3023_s6 + $0x30] sm:$0xff] }
 0xa63   : > { %v1462_v35 = vpack.c.bf16 %v1890_v34, %v1889_v33 }
 0xaeb   : > { %v1150_v40 = vpop.xlane.xlu1 %1149 }
 0xaec   : > { %v1151_v24 = vmul.f32 0.03125, %v1150_v40 }
 0xaee   : > { %v1152_v41 = vadd.f32 1e-12, %v1151_v24 }
 0xaf0   : > { %2207 = vrsqrt.f32 %v1152_v41 }
 0xafd   : > { %v2208_v42 = vpop.eup %2207 }
 0xafe   : > { %v1154_v44 = vmul.f32 %v2208_v42, %v1146_v31 }
 0xb00   : > { %v1161_v46 = vmul.f32 %v1874_v43, %v1154_v44 }
 0xb02   : > { %v2869_v47 = vadd.f32 %v1875_v45, %v1161_v46 }
 0xb04   : > { %v1174_v48 = vpack.c.bf16 %v2869_v47, %v2869_v47 }
 0xb06   : > { %2028 = vmatmul.mubr.msk.bf16.vlgmr.msra.gmra.mxu0 %vm606_vm0, %v1174_v48 }
 0xb07   : > { %2033 = vmatprep.mubr.msk.bf16.mxu0 %vm2466_vm1, %v2465_v12 }
 0xbc6   : > { %v1222_v50 = vpop.f32.mrf.mxu0 }
 0xbc7   : > { %v1223_v51 = vadd.f32 %v1881_v49, %v1222_v50  ;;  %v1891_v50 = vld [vmem:[#allocation7 + $0x1] ss:$0 sm:$0xff] }
 0xbc8   : > { %v2029_v52 = vpop.f32.mrf.mxu0 }
 0xbc9   : > { %v1228_v53 = vpack.c.bf16 %v1223_v51, %v1223_v51 }
 0xbca   : > { %v1225_v54 = vpop.f32.mrf.mxu0 }
 0xbcb   : > { %1341 = vrot.lane.b32.xlu1 %v1228_v53, %s2469_s29  ;;  %1230 = vrot.lane.b32.xlu0 %v1228_v53, %s2468_s19  ;;  %s594_s19 = sand.u32 1, %s2447_s22   ;;  %s1916_s29 = sshll.u32 %s2580_s25, 4 }
 0xbcc   : > { %v2030_v55 = vpop.f32.mrf.mxu0  ;;  %s1724_s28 = scalar_lea.hbm %s3033_s16, %s1916_s29  ;;  %s1714_s17 = scalar_lea.sflag [#allocation4], %s594_s19 }
 0xbcd   : > { %s2385_s25 = scalar_lea.vmem %s2384_s23, 32 }
 0xbcf   : > { %1339 = vrot.lane.b32.xlu1 %v1228_v53, %s2467_s21  ;;  %s3072_s21 = smov 48  }
 0xc3d   : > { %v1231_v56 = vpop.permute.xlu0 %1230  ;;  %v1342_v58 = vpop.permute.xlu1 %1341 }
 0xc3e   : > { %v1236_v57 = vsel %vm696_vm2, %v1231_v56, 0  ;;  %v1347_v59 = vsel %vm696_vm2, %v1342_v58, 0 }
 0xc3f   : > { %2032 = vmatpush3.bf16.xpose.msra.mxu0 %v1236_v57 }
 0xc40   : > { %2043 = vmatprep.subr.bf16.mxu0 %v2465_v12 }
 0xc41   : > { %v1340_v60 = vpop.permute.xlu1 %1339 }
 0xc46   : > { %2034 = vmatmul.mubr.msk.bf16.vlgmr.msra.gmra.mxu0 %vm696_vm2, %v1228_v53 }
 0xc47   : > { %2044 = vmatpush3.bf16.xpose.msra.mxu0 %v1347_v59  ;;  %2045 = vmatprep.mubr.msk.bf16.mxu0 %vm2466_vm1, %v2465_v12 }
 0xc48   : > { %2055 = vmatprep.subr.bf16.mxu0 %v2465_v12 }
 0xc4e   : > { %2046 = vmatmul.mubr.msk.bf16.vlgmr.msra.gmra.mxu0 %vm696_vm2, %v1340_v60 }
 0xc4f   : > { %2059 = vmatprep.mubr.msk.bf16.mxu0 %vm2466_vm1, %v2465_v12  ;;  %2056 = vmatpush3.bf16.msra.mxu0 %v1462_v35 }
 0xc50   : > { %2057 = vmatprep.subr.bf16.mxu0 %v2465_v12 }
 0xc53   : > { %2058 = vmatpush3.bf16.msra.mxu0 %v1461_v38 }
 0xc54   : > { %2071 = vmatprep.subr.bf16.mxu0 %v2465_v12 }
 0xd06   : > { %v1272_v61 = vpop.f32.mrf.mxu0 }
 0xd07   : > { %v1278_v62 = vmul.f32 0.25, %v1272_v61 }
 0xd08   : > { %v2035_v63 = vpop.f32.mrf.mxu0 }
 0xd09   : > { %v1279_v0 = vsel %vm744_vm3, %v1278_v62, -inf  ;;  %v1899_v63 = vld [vmem:[%s3027_s10 + $0x30] sm:$0xff] }
 0xd0a   : > { %1280 = vmax.xlane.f32.xlu0 %v1279_v0  ;;  %v1275_v1 = vpop.f32.mrf.mxu0 }
 0xd0b   : > { %v1897_v1 = vld [vmem:[%s3027_s10 + $0x20] sm:$0xff] }
 0xd0c   : > { %v2036_v2 = vpop.f32.mrf.mxu0 }
 0xd0d   : > { %v1898_v2 = vld [vmem:[%s3027_s10 + $0x28] sm:$0xff] }
 0xd0e   : > { %v1383_v3 = vpop.f32.mrf.mxu0 }
 0xd0f   : > { %v1389_v4 = vmul.f32 0.25, %v1383_v3  ;;  %v1552_v3 = vpack.c.bf16 %v1898_v2, %v1897_v1 }
 0xd10   : > { %v2047_v5 = vpop.f32.mrf.mxu0 }
 0xd11   : > { %v1390_v6 = vsel %vm744_vm3, %v1389_v4, -inf }
 0xd12   : > { %1391 = vmax.xlane.f32.xlu1 %v1390_v6  ;;  %v1386_v7 = vpop.f32.mrf.mxu0 }
 0xd14   : > { %v2048_v8 = vpop.f32.mrf.mxu0 }
 0xd15   : > { %v1895_v8 = vld [vmem:[%s3025_s8 + $0x1] ss:$0 sm:$0xff] }
 0xd23   : > { %1291 = vrot.lane.b32.xlu1 %v1228_v53, %s2471_s30  ;;  %s595_s30 = scalar_lea.vmem [#allocation13], %s594_s19 }
 0xd24   : > { %s1726_s26 = sshll.u32 %s595_s30, 4  ;;  %s1727_s26 = int_to_ptr.vmem [resolvable:$true] %s1726_s26 }
 0xd25   : > { %p2386_p13 = scmp.lt.s32.totalorder %s1727_s26, %s2384_s23 }
 0xd93   : > { %v1281_v9 = vpop.xlane.xlu0 %1280 }
 0xd94   : > { %v1282_v10 = vsub.f32 %v1278_v62, %v1281_v9 }
 0xd96   : > { %v1283_v11 = vmul.f32 1.442695, %v1282_v10  ;;  %v1896_v10 = vld [vmem:[%s3026_s9 + $0x1] ss:$0 sm:$0xff] }
 0xd98   : > { %2209 = vpow2.f32 %v1283_v11 }
 0xd9b   : > { %v1392_v13 = vpop.xlane.xlu1 %1391 }
 0xd9c   : > { %v1393_v14 = vsub.f32 %v1389_v4, %v1392_v13 }
 0xd9e   : > { %v1394_v15 = vmul.f32 1.442695, %v1393_v14 }
 0xd9f   : > { %v1292_v16 = vpop.permute.xlu1 %1291 }
 0xda0   : > { %2211 = vpow2.f32 %v1394_v15  ;;  %v1297_v17 = vsel %vm762_vm4, %v1292_v16, 0  ;;  %v1910_v15 = vld [vmem:[%s3029_s12 + $0x70] sm:$0xff]  ;;  %v1911_v16 = vld [vmem:[%s3029_s12 + $0x78] sm:$0xff] }
 0xda1   : > { %2038 = vmatpush3.bf16.msra.mxu1 %v1297_v17  ;;  %v1908_v17 = vld [vmem:[%s3029_s12 + $0x60] sm:$0xff] }
 0xda2   : > { %2049 = vmatprep.subr.bf16.mxu1 %v2465_v12 }
 0xda5   : > { %v2210_v18 = vpop.eup %2209 }
 0xda6   : > { %v1285_v19 = vsel %vm744_vm3, %v2210_v18, 0.0 }
 0xda7   : > { %1286 = vadd.xlane.f32.xlu0 %v1285_v19  ;;  %v1909_v19 = vld [vmem:[%s3029_s12 + $0x68] sm:$0xff] }
 0xdad   : > { %v2212_v20 = vpop.eup %2211 }
 0xdae   : > { %v1396_v21 = vsel %vm744_vm3, %v2212_v20, 0.0 }
 0xdaf   : > { %1397 = vadd.xlane.f32.xlu0 %v1396_v21  ;;  %v1906_v21 = vld [vmem:[%s3029_s12 + $0x50] sm:$0xff] }
 0xdc5   : > { %1402 = vrot.lane.b32.xlu0 %v1228_v53, %s3072_s21 }
 0xe30   : > { %v1287_v22 = vpop.xlane.xlu0 %1286 }
 0xe31   : > { %2213 = vrcp.f32 %v1287_v22  ;;  %v1907_v22 = vld [vmem:[%s3029_s12 + $0x58] sm:$0xff] }
 0xe38   : > { %v1398_v23 = vpop.xlane.xlu0 %1397 }
 0xe39   : > { %2215 = vrcp.f32 %v1398_v23  ;;  %v1625_v23 = vpack.c.bf16 %v1907_v22, %v1906_v21 }
 0xe3c   : > { %v1403_v27 = vpop.permute.xlu0 %1402 }
 0xe3d   : > { %v1408_v29 = vsel %vm762_vm4, %v1403_v27, 0 }
 0xe3e   : > { %v2214_v25 = vpop.eup %2213 }
 0xe3f   : > { %v1289_v26 = vmul.f32 %v2214_v25, %v2210_v18  ;;  %v1627_v18 = vpack.c.bf16 %v1911_v16, %v1910_v15  ;;  %v1904_v25 = vld [vmem:[%s3029_s12 + $0x40] sm:$0xff] }
 0xe41   : > { %v1290_v28 = vpack.c.bf16 %v1289_v26, %v1289_v26  ;;  %v1905_v26 = vld [vmem:[%s3029_s12 + $0x48] sm:$0xff] }
 0xe42   : > { %v1624_v27 = vpack.c.bf16 %v1905_v26, %v1904_v25 }
 0xe43   : > { %2040 = vmatmul.mubr.msk.bf16.vlgmr.msra.gmra.mxu1 %vm744_vm3, %v1290_v28  ;;  %v1902_v28 = vld [vmem:[%s3028_s11 + $0x1] ss:$0 sm:$0xff] }
 0xe44   : > { %2050 = vmatpush3.bf16.msra.mxu1 %v1408_v29  ;;  %2051 = vmatprep.mubr.msk.bf16.mxu1 %vm2466_vm1, %v2465_v12 }
 0xe45   : > { %2063 = vmatprep.subr.bf16.mxu1 %v2465_v12 }
 0xe46   : > { %v2216_v30 = vpop.eup %2215 }
 0xe47   : > { %v1400_v31 = vmul.f32 %v2216_v30, %v2212_v20  ;;  %v1626_v20 = vpack.c.bf16 %v1909_v19, %v1908_v17 }
 0xe49   : > { %v1401_v32 = vpack.c.bf16 %v1400_v31, %v1400_v31 }
 0xe4b   : > { %2052 = vmatmul.mubr.msk.bf16.vlgmr.msra.gmra.mxu1 %vm744_vm3, %v1401_v32 }
 0xe4c   : > { %2067 = vmatprep.mubr.msk.bf16.mxu1 %vm2466_vm1, %v2465_v12 }
 0xf03   : > { %v1333_v39 = vpop.f32.mrf.mxu1 }
 0xf05   : > { %v2041_v40 = vpop.f32.mrf.mxu1 }
 0xf07   : > { %v1336_v24 = vpop.f32.mrf.mxu1 }
 0xf09   : > { %v2042_v41 = vpop.f32.mrf.mxu1 }
 0xf0b   : > { %v1444_v42 = vpop.f32.mrf.mxu1 }
 0xf0c   : > { %1451 = vrot.lane.b32.xlu1 %v1444_v42, %s3073_s27  ;;  %v1912_v42 = vld [vmem:[#allocation8 + $0x1] ss:$0 sm:$0xff]  ;;  %s2379_s27 = scalar_lea.vmem %s1727_s26, 16 }
 0xf0d   : > { %v2053_v43 = vpop.f32.mrf.mxu1  ;;  %p2380_p2 = scmp.ne.s32.totalorder %s1727_s26, %s2379_s27  ;;  %p2387_p7 = scmp.lt.s32.totalorder %s2385_s25, %s2379_s27 }
 0xf0f   : > { %v1447_v44 = vpop.f32.mrf.mxu1  ;;  %p2381_p4 = pnand %p2380_p2, %p2597_p5  ;;  %p2388_p8 = por %p2387_p7, %p2386_p13 }
 0xf11   : > { %v2054_v45 = vpop.f32.mrf.mxu1  ;;  %p2382_p9 = pneg %p2381_p4 }
 0xf13   : > { %p2389_p11 = pnand %p2388_p8, %p2382_p9 }
 0xf7e   : > { %v1452_v46 = vpop.permute.xlu1 %1451 }
 0xf7f   : > { %v1454_v48 = vsel %vm696_vm2, %v1333_v39, %v1452_v46 }
 0xf80   : > { %v1460_v49 = vpack.c.bf16 %v1454_v48, %v1454_v48 }
 0xf82   : > { %2060 = vmatmul.mubr.msk.bf16.vlgmr.msra.gmra.mxu0 %vm606_vm0, %v1460_v49 }
 0xf83   : > { %2079 = vmatprep.mubr.msk.bf16.mxu0 %vm2466_vm1, %v2465_v12  ;;  %2072 = vmatpush3.bf16.msra.mxu0 %v1627_v18 }
 0xf84   : > { %2073 = vmatprep.subr.bf16.mxu0 %v2465_v12 }
 0xf87   : > { %2074 = vmatpush3.bf16.msra.mxu0 %v1626_v20 }
 0xf88   : > { %2075 = vmatprep.subr.bf16.mxu0 %v2465_v12 }
 0xf8b   : > { %2076 = vmatpush3.bf16.msra.mxu0 %v1625_v23 }
 0xf8c   : > { %2077 = vmatprep.subr.bf16.mxu0 %v2465_v12 }
 0xf8f   : > { %2078 = vmatpush3.bf16.msra.mxu0 %v1624_v27 }
0x1042   : > { %v1508_v51 = vpop.f32.mrf.mxu0 }
0x1043   : > { %v1509_v52 = vadd.f32 %v1891_v50, %v1508_v51 }
0x1044   : > { %v2061_v53 = vpop.f32.mrf.mxu0 }
0x1045   : > { %v1514_v54 = vadd.f32 %v1509_v52, %v2869_v47  ;;  %v1900_v47 = vld [vmem:[%s3027_s10 + $0x38] sm:$0xff] }
0x1046   : > { %v1511_v55 = vpop.f32.mrf.mxu0  ;;  %v1553_v0 = vpack.c.bf16 %v1900_v47, %v1899_v63 }
0x1047   : > { %v1519_v56 = vsel %vm606_vm0, %v1514_v54, 0.0 }
0x1048   : > { %1520 = vadd.xlane.f32.xlu1 %v1519_v56  ;;  %v2062_v57 = vpop.f32.mrf.mxu0  ;;  %2064 = vmatpush3.bf16.msra.mxu1 %v1553_v0 }
0x1049   : > { %2065 = vmatprep.subr.bf16.mxu1 %v2465_v12 }
0x104c   : > { %2066 = vmatpush3.bf16.msra.mxu1 %v1552_v3 }
0x10d1   : > { %v1521_v58 = vpop.xlane.xlu1 %1520 }
0x10d2   : > { %v1522_v59 = vmul.f32 0.03125, %v1521_v58 }
0x10d4   : > { %v1523_v60 = vsub.f32 %v1514_v54, %v1522_v59 }
0x10d6   : > { %v1524_v61 = vmul.f32 %v1523_v60, %v1523_v60 }
0x10d8   : > { %v1525_v62 = vsel %vm606_vm0, %v1524_v61, 0.0 }
0x10d9   : > { %1526 = vadd.xlane.f32.xlu0 %v1525_v62  ;;  %v1915_v62 = vld [vmem:[#allocation11 + $0x1] ss:$0 sm:$0xff] }
0x1162   : > { %v1527_v4 = vpop.xlane.xlu0 %1526 }
0x1163   : > { %v1528_v5 = vmul.f32 0.03125, %v1527_v4 }
0x1165   : > { %v1529_v6 = vadd.f32 1e-12, %v1528_v5 }
0x1167   : > { %2217 = vrsqrt.f32 %v1529_v6 }
0x1174   : > { %v2218_v7 = vpop.eup %2217 }
0x1175   : > { %v1531_v9 = vmul.f32 %v2218_v7, %v1523_v60  ;;  %v1914_v60 = vld [vmem:[#allocation10 + $0x1] ss:$0 sm:$0xff] }
0x1177   : > { %v1538_v11 = vmul.f32 %v1895_v8, %v1531_v9 }
0x1179   : > { %v1545_v13 = vadd.f32 %v1896_v10, %v1538_v11 }
0x117b   : > { %v1551_v14 = vpack.c.bf16 %v1545_v13, %v1545_v13 }
0x117d   : > { %2068 = vmatmul.mubr.msk.bf16.vlgmr.msra.gmra.mxu1 %vm606_vm0, %v1551_v14 }
0x123d   : > { %v1599_v29 = vpop.f32.mrf.mxu1 }
0x123e   : > { %v1600_v30 = vadd.f32 %v1902_v28, %v1599_v29 }
0x123f   : > { %v2069_v31 = vpop.f32.mrf.mxu1 }
0x1240   : > { %v1606_v32 = vmul.f32 0.044715, %v1600_v30  ;;  %v1605_v40 = vmul.f32 0.5, %v1600_v30 }
0x1241   : > { %v1602_v33 = vpop.f32.mrf.mxu1 }
0x1242   : > { %v1607_v34 = vmul.f32 %v1606_v32, %v1600_v30 }
0x1243   : > { %v2070_v35 = vpop.f32.mrf.mxu1 }
0x1244   : > { %v1608_v36 = vmul.f32 %v1607_v34, %v1600_v30 }
0x1246   : > { %v1609_v37 = vadd.f32 %v1608_v36, %v1600_v30 }
0x1248   : > { %v1610_v38 = vmul.f32 0.7978846, %v1609_v37 }
0x124a   : > { %2219 = vtanh.f32 %v1610_v38 }
0x1257   : > { %v2220_v39 = vpop.eup %2219 }
0x1258   : > { %v1612_v24 = vadd.f32 1.0, %v2220_v39 }
0x125a   : > { %v1613_v12 = vmul.f32 %v1612_v24, %v1605_v40 }
0x125c   : > { %v1623_v41 = vpack.c.bf16 %v1613_v12, %v1613_v12 }
0x125e   : > { %2080 = vmatmul.mubr.msk.bf16.vlgmr.msra.gmra.mxu0 %vm1095_vm5, %v1623_v41 }
0x131e   : > { %v1673_v43 = vpop.f32.mrf.mxu0 }
0x131f   : > { %v1674_v44 = vadd.f32 %v1912_v42, %v1673_v43 }
0x1320   : > { %v2081_v45 = vpop.f32.mrf.mxu0 }
0x1321   : > { %v1679_v46 = vadd.f32 %v1674_v44, %v1545_v13 }
0x1322   : > { %v1676_v48 = vpop.f32.mrf.mxu0 }
0x1323   : > { %v1684_v49 = vsel %vm606_vm0, %v1679_v46, 0.0 }
0x1324   : > { %1685 = vadd.xlane.f32.xlu0 %v1684_v49  ;;  %v2082_v50 = vpop.f32.mrf.mxu0 }
0x13ad   : > { %v1686_v51 = vpop.xlane.xlu0 %1685 }
0x13ae   : > { %v1687_v52 = vmul.f32 0.03125, %v1686_v51 }
0x13b0   : > { %v1688_v53 = vsub.f32 %v1679_v46, %v1687_v52 }
0x13b2   : > { %v1689_v54 = vmul.f32 %v1688_v53, %v1688_v53 }
0x13b4   : > { %v1690_v55 = vsel %vm606_vm0, %v1689_v54, 0.0 }
0x13b5   : > { %1691 = vadd.xlane.f32.xlu1 %v1690_v55 }
0x143e   : > { %v1692_v56 = vpop.xlane.xlu1 %1691 }
0x143f   : > { %v1693_v57 = vmul.f32 0.03125, %v1692_v56 }
0x1441   : > { %v1694_v58 = vadd.f32 1e-12, %v1693_v57 }
0x1443   : > { %2221 = vrsqrt.f32 %v1694_v58 }
0x1450   : > { %v2222_v59 = vpop.eup %2221 }
0x1451   : > { %v1696_v61 = vmul.f32 %v2222_v59, %v1688_v53 }
0x1453   : > { %v1703_v63 = vmul.f32 %v1914_v60, %v1696_v61 }
0x1455   : > { %v1710_v47 = vadd.f32 %v1915_v62, %v1703_v63 }
0x1457   : > { %1712 = vst.msk [vmem:[%s595_s30] sm:$0x1] %vm1711_vm6, %v1710_v47 }
0x1458   : > { %2392 = shalt.err (!%p2389_p11)
}
0x1459   : > { %s2393_s18 = scalar_lea.hbm %s1724_s28, 16  ;;  %s2397_s29 = scalar_lea.hbm %s3033_s16, 32 }
0x145a   : > { %p2394_p0 = scmp.ne.s32.totalorder %s1724_s28, %s2393_s18  ;;  %p2398_p1 = scmp.lt.s32.totalorder %s1724_s28, %s3033_s16 }
0x145b   : > { %p2399_p3 = scmp.lt.s32.totalorder %s2397_s29, %s2393_s18 }
0x145c   : > { %p2395_p12 = pnand %p2394_p0, %p2597_p5 }
0x145d   : > { %p2400_p2 = por %p2399_p3, %p2398_p1 }
0x145e   : > { %p2396_p10 = pneg %p2395_p12 }
0x1460   : > { %p2401_p4 = pnand %p2400_p2, %p2396_p10 }
0x1462   : > { %2404 = shalt.err (!%p2401_p4)
}
0x1463   : > { %2107 = dma.vmem_to_hbm [thread:$0]  (%p2597_p5), %s1727_s26, 16, %s1724_s28, %s1714_s17  }
0x1464 PF: > { %s3074_s24 = sld [smem:[#allocation21_spill]] }
0x1465   : > { %s3075_s27 = sld [smem:[#allocation19_spill]] }
0x146a   : > { %p2144_p9 = scmp.ge.s32.totalorder %s3074_s24, 2 }
0x146b   : > { %s1738_s23 = sand.u32 1, %s3075_s27  }
0x146c   : > { %p2129_p13 = pnand %p2144_p9, %p2601_p6  ;;  %s1739_s25 = scalar_lea.sflag [#allocation4], %s1738_s23 }
0x146e   : > { %p2130_p7 = pneg %p2129_p13 }
0x1470   : > { %2438 = dma.done.wait (%p2130_p7), %s1739_s25, 16  }
0x1471   : > { %2440 = vsyncadd (%p2130_p7), %s1739_s25, 4294967280  ;;  %s3077_s24 = sld [smem:[#allocation22_spill]]  ;;  %s3080_s21 = smov %s2447_s22 }
0x1472   : > { %s3078_s18 = sld [smem:[#allocation20_spill]] }
0x1473   : > { %s3079_s23 = sld [smem:[#allocation23_spill]] }
0x1477   : > { %p30_p8 = scmp.ge.s32.totalorder %s3077_s24, 4  }
0x1478   : > { %s3081_s22 = smov %s3078_s18 }
0x1479   :  { %32 = sbr.rel (!%p30_p8) target bundleno = 10 (0xa), region = 156 }
0x147e   :  { %1743 = vsyncpa [#allocation3], 1 }
0x147f   :  { %1745 = vsyncpa [#allocation3 + $0x1], 1 }
0x1480   :  { %1746 = vsyncpa [#allocation6], 1 }
0x1481   :  { %1747 = vsyncpa [#allocation9], 1 }
0x1482   :  { %1748 = vsyncpa [#allocation12], 1 }
0x1483   :  { %1749 = vsyncpa [#allocation4], 1 }
0x1484   :  { %1751 = vsyncpa [#allocation4 + $0x1], 1 }

</bundles_post_ra>
